<compile_context>
chip_gen: v6e
topology: v6e:2x2x1
jax: 0.10.0
libtpu: 0.0.40
codegen_flags: <defaults>
</compile_context>

<pallas_src>
import math

import jax
import jax.numpy as jnp
from jax import lax
from jax.experimental import pallas as pl
from jax.experimental.pallas import tpu as pltpu


# --------------------------------------------------------------------------
# Generation-aware VMEM budgets (v7x TensorCore: 64 MiB, v5e/v6e: 128 MiB).
# --------------------------------------------------------------------------
def _tpu_vmem_limits():
    cap = 128 * 1024 * 1024
    try:
        info = pltpu.get_tpu_info()
        cap = int(getattr(info, "vmem_capacity_bytes", cap))
    except Exception:
        pass
    if cap <= 64 * 1024 * 1024:                       # v7x-class TensorCore
        return 26 * 1024 * 1024, 40 * 1024 * 1024
    return 80 * 1024 * 1024, 96 * 1024 * 1024         # v5e / v6e


_VMEM_BUDGET, _VMEM_LIMIT = _tpu_vmem_limits()


# --------------------------------------------------------------------------
# 3x3 same-padding conv, fused Key+Value heads (KeyValue hot path)
# --------------------------------------------------------------------------
def _conv3x3_fused_kernel(x_ref, w_ref, b_ref, o_ref):
    # x_ref: (1, H+2, W+2, Cin) zero-padded NHWC image (bf16); its block index
    #        is constant across the row-tile grid axis, so it stays resident.
    # w_ref: (3, 3*Cin, CoutP)  per-dx taps, dy folded into the contraction.
    # b_ref: (1, CoutP)         f32
    # o_ref: (1, th*W, CoutP)   lane-dense flattened row tile.
    cin = x_ref.shape[3]
    width = x_ref.shape[2] - 2
    coutp = o_ref.shape[2]
    th = o_ref.shape[1] // width
    h0 = pl.multiple_of(pl.program_id(1) * th, th)
    x = x_ref[:, pl.ds(h0, th + 2), :, :][0]                 # (th+2, W+2, Cin)
    # dy folded into channels once (hoisted out of the dx loop).
    xcat = jnp.concatenate([x[0:th], x[1:th + 1], x[2:th + 2]],
                           axis=-1)                           # (th, W+2, 3*Cin)
    # Accumulator initialized from the broadcast bias (saves a VPU add pass).
    acc = jnp.broadcast_to(b_ref[0], (th * width, coutp))
    for dx in range(3):
        lhs = xcat[:, dx:dx + width, :].reshape(th * width, 3 * cin)
        acc = acc + jnp.dot(lhs, w_ref[dx],
                            preferred_element_type=jnp.float32)
    o_ref[0] = acc.astype(o_ref.dtype)


def _pick_conv_row_tile(H, W, Cin, CoutP, budget):
    valid = [t for t in sorted({H, 256, 128, 64, 32, 16, 8}, reverse=True)
             if t <= H and H % t == 0]
    fixed = (H + 2) * (W + 2) * Cin * 2 + 3 * 3 * Cin * CoutP * 2
    for th in valid:
        work = (th * (W + 2) * 3 * Cin * 2            # xcat (bf16)
                + th * W * 3 * Cin * 2                # shifted lhs copy (bf16)
                + th * W * CoutP * 4                  # f32 accumulator
                + 2 * 2 * th * W * CoutP * 2)         # double-buffered outputs
        if fixed + work <= budget:
            return th
    return valid[-1]


def _prepare_conv3x3_params(weight, bias):
    """Fold PyTorch OIHW conv params once: (3, 3*Cin, CoutP) bf16 taps with dy
    in the contraction dim, Cout padded to a lane multiple of 128."""
    cout, cin = weight.shape[0], weight.shape[1]
    coutp = ((cout + 127) // 128) * 128
    # (Cout, Cin, dy, dx) -> (dx, dy, Cin, Cout) -> (3, 3*Cin, Cout)
    w = jnp.transpose(weight, (3, 2, 1, 0)).reshape(3, 3 * cin, cout)
    b = bias
    if coutp != cout:
        w = jnp.pad(w, ((0, 0), (0, 0), (0, coutp - cout)))
        b = jnp.pad(b, (0, coutp - cout))
    return w.astype(jnp.bfloat16), b.reshape(1, coutp).astype(jnp.float32), cout


def _conv3x3_packed(x_nchw, w_packed, b_packed, cout, out_dtype=jnp.bfloat16):
    N, Cin, H, W = x_nchw.shape
    coutp = w_packed.shape[2]
    th = _pick_conv_row_tile(H, W, Cin, coutp, _VMEM_BUDGET)
    # TODO(synk): keep activations NHWC end-to-end once the surrounding
    # backbone modules exist; for now one transpose+pad per fused call.
    x = jnp.transpose(x_nchw, (0, 2, 3, 1)).astype(jnp.bfloat16)      # NHWC
    x = jnp.pad(x, ((0, 0), (1, 1), (1, 1), (0, 0)))
    out = pl.pallas_call(
        _conv3x3_fused_kernel,
        out_shape=jax.ShapeDtypeStruct((N, H * W, coutp), out_dtype),
        grid=(N, H // th),
        in_specs=[
            pl.BlockSpec((1, H + 2, W + 2, Cin), lambda n, h: (n, 0, 0, 0)),
            pl.BlockSpec((3, 3 * Cin, coutp), lambda n, h: (0, 0, 0)),
            pl.BlockSpec((1, coutp), lambda n, h: (0, 0)),
        ],
        out_specs=pl.BlockSpec((1, th * W, coutp), lambda n, h: (n, h, 0)),
        compiler_params=pltpu.CompilerParams(
            dimension_semantics=("parallel", "parallel"),
            vmem_limit_bytes=_VMEM_LIMIT),
    )(x, w_packed, b_packed)
    out = out.reshape(N, H, W, coutp)[..., :cout]
    return jnp.transpose(out, (0, 3, 1, 2))                           # NCHW


def conv3x3(x_nchw, weight, bias, out_dtype=jnp.bfloat16):
    """PyTorch-equivalent nn.Conv2d(Cin, Cout, 3, padding=1, stride=1)."""
    w_packed, b_packed, cout = _prepare_conv3x3_params(weight, bias)
    return _conv3x3_packed(x_nchw, w_packed, b_packed, cout, out_dtype)


# --------------------------------------------------------------------------
# Memory read (Memory.forward): p = softmax(K_m^T Q / sqrt(C), over memory)
#                               mem = V_m @ p   -- query- and memory-tiled
# --------------------------------------------------------------------------
def _memory_kernel(mi_ref, mo_ref, qi_ref, out_ref, m_sc, l_sc, acc_sc):
    # mi_ref : (1, tm, C)   memory-key tile, pre-transposed in HBM   (bf16)
    # mo_ref : (1, vd, tm)  memory-value tile                        (bf16)
    # qi_ref : (1, C, tq)   query tile, pre-scaled by 1/sqrt(C)      (bf16)
    # out_ref: (1, vd, tq)  f32
    # m_sc/l_sc: (1, tq) f32 running max / denominator; acc_sc: (vd, tq) f32
    mt = pl.program_id(2)

    @pl.when(mt == 0)
    def _():
        m_sc[...] = jnp.full_like(m_sc, -jnp.inf)
        l_sc[...] = jnp.zeros_like(l_sc)
        acc_sc[...] = jnp.zeros_like(acc_sc)

    # Scores (tm, tq): plain matmul -- neither operand is transposed in-kernel.
    s = jnp.dot(mi_ref[0], qi_ref[0], preferred_element_type=jnp.float32)

    # Online softmax over the memory axis (exact; a single memory tile reduces
    # to the ordinary softmax).
    m_prev = m_sc[...]
    m_new = jnp.maximum(m_prev, jnp.max(s, axis=0, keepdims=True))
    alpha = jnp.exp(m_prev - m_new)
    e = jnp.exp(s - m_new)
    l_sc[...] = alpha * l_sc[...] + jnp.sum(e, axis=0, keepdims=True)
    acc_sc[...] = alpha * acc_sc[...] + jnp.dot(
        mo_ref[0], e.astype(jnp.bfloat16), preferred_element_type=jnp.float32)
    m_sc[...] = m_new

    @pl.when(mt == pl.num_programs(2) - 1)
    def _():
        # approx reciprocal lands on the otherwise-idle EUP slot (~1e-3 rel).
        out_ref[0] = (acc_sc[...] *
                      pl.reciprocal(l_sc[...], approx=True)).astype(out_ref.dtype)


def _pick_mem_tiles(HW, HWm, C, vd, budget):
    def cands(dim):
        cs = {dim}
        for x in (8192, 4096, 2048, 1024, 512, 256, 128):
            if x <= dim and dim % x == 0:
                cs.add(x)
        return sorted(cs, reverse=True)

    q_c, m_c = cands(HW), cands(HWm)
    for tq in q_c:
        for tm in m_c:
            blocks = 2 * (tm * C * 2 + vd * tm * 2 + C * tq * 2 + vd * tq * 4)
            scratch = vd * tq * 4 + 2 * tq * 4
            work = 3 * tm * tq * 4 + tm * tq * 2
            if blocks + scratch + work <= budget:
                return tq, tm
    return q_c[-1], m_c[-1]


def memory_read(m_in, m_out, q_in, q_out, query_tile=None, mem_tile=None):
    """Equivalent of Memory.forward; returns (mem, q_out).

    q_in may carry batch 1 (un-broadcast query): the BlockSpec index_map then
    reuses the single query block for every object instead of materializing
    num_objects copies in HBM.
    """
    no, C = m_in.shape[0], m_in.shape[1]
    vd = m_out.shape[1]
    qB, Cq, H, W = q_in.shape
    HW = H * W
    HWm = m_in.shape[2] * m_in.shape[3]

    # One-time HBM transpose of the memory keys to (no, HWm, C): the in-kernel
    # score matmul is then a plain (tm,C)@(C,tq) with no per-step relayout.
    mi = jnp.transpose(m_in.reshape(no, C, HWm), (0, 2, 1)).astype(jnp.bfloat16)
    mo = m_out.reshape(no, vd, HWm).astype(jnp.bfloat16)
    # 1/sqrt(C) folded into the (tiny) query cast instead of scaling every
    # (tm, tq) score block.
    qi = (q_in.reshape(qB, Cq, HW) * (1.0 / math.sqrt(C))).astype(jnp.bfloat16)

    tq, tm = _pick_mem_tiles(HW, HWm, C, vd, _VMEM_BUDGET)
    if query_tile is not None:
        tq = query_tile
    if mem_tile is not None:
        tm = mem_tile
    n_qt, n_mt = HW // tq, HWm // tm

    q_shared = (qB == 1)
    qi_map = ((lambda b, qt, mt: (0, 0, qt)) if q_shared
              else (lambda b, qt, mt: (b, 0, qt)))

    mem = pl.pallas_call(
        _memory_kernel,
        out_shape=jax.ShapeDtypeStruct((no, vd, HW), jnp.float32),
        grid=(no, n_qt, n_mt),
        in_specs=[
            pl.BlockSpec((1, tm, C), lambda b, qt, mt: (b, mt, 0)),
            pl.BlockSpec((1, vd, tm), lambda b, qt, mt: (b, 0, mt)),
            pl.BlockSpec((1, Cq, tq), qi_map),
        ],
        out_specs=pl.BlockSpec((1, vd, tq), lambda b, qt, mt: (b, 0, qt)),
        scratch_shapes=[
            pltpu.VMEM((1, tq), jnp.float32),     # running max
            pltpu.VMEM((1, tq), jnp.float32),     # running denominator
            pltpu.VMEM((vd, tq), jnp.float32),    # output accumulator
        ],
        compiler_params=pltpu.CompilerParams(
            # Objects shard across cores; only shard the query axis when there
            # is a single object (avoids duplicating key/value DMA traffic).
            dimension_semantics=("parallel",
                                 "parallel" if no == 1 else "arbitrary",
                                 "arbitrary"),
            vmem_limit_bytes=_VMEM_LIMIT),
    )(mi, mo, qi)
    return mem.reshape(no, vd, H, W), q_out


# --------------------------------------------------------------------------
# Soft_aggregation (lane-tiled, flattened spatial, in-kernel absent-object fill)
# --------------------------------------------------------------------------
def _soft_agg_kernel(ps_ref, o_ref):
    # ps_ref: (num_objects, t)    probabilities for present objects
    # o_ref : (max_obj + 1, t)    logits (background, objects, absent-fill)
    eps = 1e-7
    no = ps_ref.shape[0]
    mo1 = o_ref.shape[0]
    ps = ps_ref[...]
    bg = jnp.clip(jnp.prod(1.0 - ps, axis=0, keepdims=True), eps, 1.0 - eps)
    fg = jnp.clip(ps, eps, 1.0 - eps)
    o_ref[0:1, :] = jnp.log(bg / (1.0 - bg))
    o_ref[1:no + 1, :] = jnp.log(fg / (1.0 - fg))
    if no + 1 < mo1:     # objects beyond num_objects: em == 0 -> clamp(eps)
        o_ref[no + 1:, :] = jnp.full(
            (mo1 - no - 1, o_ref.shape[1]),
            math.log(eps / (1.0 - eps)), jnp.float32)


def _pick_lane_tile(HW):
    for t in (32768, 16384, 8192, 4096, 2048, 1024, 512, 256, 128):
        if HW % t == 0:
            return t
    return HW


def soft_aggregation(ps, max_obj):
    num_objects, H, W = ps.shape
    HW = H * W
    ps_flat = ps.reshape(num_objects, HW).astype(jnp.float32)
    t = _pick_lane_tile(HW)
    out = pl.pallas_call(
        _soft_agg_kernel,
        out_shape=jax.ShapeDtypeStruct((max_obj + 1, HW), jnp.float32),
        grid=(HW // t,),
        in_specs=[pl.BlockSpec((num_objects, t), lambda i: (0, i))],
        out_specs=pl.BlockSpec((max_obj + 1, t), lambda i: (0, i)),
        compiler_params=pltpu.CompilerParams(
            dimension_semantics=("parallel",),
            vmem_limit_bytes=_VMEM_LIMIT),
    )(ps_flat)
    return out.reshape(1, max_obj + 1, H, W)


# --------------------------------------------------------------------------
# Module wrappers (deterministic synthetic parameters)
# --------------------------------------------------------------------------
class KeyValue:
    """Fused Key/Value 3x3 conv heads: single pallas_call, split on channels.
    Packed (dy-folded, lane-padded, bf16) parameters are built once at init."""

    def __init__(self, key, indim, keydim, valdim):
        k1, k2, k3, k4 = jax.random.split(key, 4)
        s = 1.0 / math.sqrt(indim * 9)
        self.keydim = keydim
        self.valdim = valdim
        self.wk = jax.random.normal(k1, (keydim, indim, 3, 3), jnp.float32) * s
        self.bk = jax.random.normal(k2, (keydim,), jnp.float32) * s
        self.wv = jax.random.normal(k3, (valdim, indim, 3, 3), jnp.float32) * s
        self.bv = jax.random.normal(k4, (valdim,), jnp.float32) * s
        w_kv = jnp.concatenate([self.wk, self.wv], axis=0)
        b_kv = jnp.concatenate([self.bk, self.bv], axis=0)
        self.w_packed, self.b_packed, self.cout = _prepare_conv3x3_params(w_kv, b_kv)

    def __call__(self, x):
        out = _conv3x3_packed(x, self.w_packed, self.b_packed, self.cout)
        return out[:, :self.keydim], out[:, self.keydim:]


class MTPallas:
    """Pallas implementation of the MT compute core (KeyValue heads, the
    space-time Memory read, and Soft_aggregation)."""

    def __init__(self, key, keydim, valdim):
        self.keydim = keydim
        self.valdim = valdim
        k1, k2, k3, k4 = jax.random.split(key, 4)
        self.KV_M_r31 = KeyValue(k1, 128, keydim // 2, keydim // 2)
        self.KV_M_r41 = KeyValue(k2, 256, keydim // 2, keydim // 2)
        self.KV_Q_r31 = KeyValue(k3, 128, keydim // 2, keydim // 2)
        self.KV_Q_r41 = KeyValue(k4, 128, keydim // 2, keydim // 2)
        # TODO(synk): Encoder_M / Encoder_Q / REFINEV3 / GCM1 / GQ / arm / ffm /
        # CoordAtt / BiSeNetOutput depend on backbone modules not provided in
        # the source; only the memory-attention / KeyValue / Soft_aggregation
        # hot paths are implemented as Pallas kernels.

    def segment_core(self, r4s, r3s, keys, values, keys3, values3, num_objects):
        k4, v4 = self.KV_Q_r41(r4s)
        k3, v3 = self.KV_Q_r31(r3s)
        # q_out expansion stays metadata-only; the query key is NOT broadcast
        # to num_objects before the memory read (the kernel reuses block 0).
        v4e = jnp.broadcast_to(v4, (num_objects,) + v4.shape[1:])
        v3e = jnp.broadcast_to(v3, (num_objects,) + v3.shape[1:])
        mem1, qv1 = memory_read(keys, values, k4, v4e)
        mem2, qv2 = memory_read(keys3, values3, k3, v3e)
        # stand-in for softmax(segscore)[:, 1] (decoder not available)
        psd = jax.nn.softmax(mem1, axis=1)[:, 1]
        logit = soft_aggregation(psd, num_objects)
        return logit, mem1, qv1, mem2, qv2, psd


# --------------------------------------------------------------------------
# Pure-JAX references (for verification)
# --------------------------------------------------------------------------
def conv3x3_ref(x, w, b):
    out = lax.conv_general_dilated(
        x, w, window_strides=(1, 1), padding=((1, 1), (1, 1)),
        dimension_numbers=('NCHW', 'OIHW', 'NCHW'))
    return out + b[None, :, None, None]


def memory_ref(m_in, m_out, q_in):
    no, C, H, W = q_in.shape
    vd = m_out.shape[1]
    HW = H * W
    mi = jnp.transpose(m_in.reshape(no, C, HW), (0, 2, 1))
    qi = q_in.reshape(no, C, HW)
    p = jnp.einsum('bnc,bcm->bnm', mi, qi) / math.sqrt(C)
    p = jax.nn.softmax(p, axis=1)
    mo = m_out.reshape(no, vd, HW)
    return jnp.einsum('bvn,bnm->bvm', mo, p).reshape(no, vd, H, W)


def soft_agg_ref(ps, max_obj):
    no, H, W = ps.shape
    em = jnp.zeros((1, max_obj + 1, H, W), jnp.float32)
    em = em.at[0, 0].set(jnp.prod(1.0 - ps, axis=0))
    em = em.at[0, 1:no + 1].set(ps)
    em = jnp.clip(em, 1e-7, 1.0 - 1e-7)
    return jnp.log(em / (1.0 - em))


# --------------------------------------------------------------------------
if __name__ == "__main__":
    keydim, valdim = 8, 8
    num_objects = 2
    H = W = 16

    model = MTPallas(jax.random.PRNGKey(0), keydim, valdim)

    kf, kr3, kk, kv, kk3, kv3 = jax.random.split(jax.random.PRNGKey(0), 6)
    r4s = jax.random.normal(kf, (1, 128, H, W), jnp.float32)   # conv_out32 analogue
    r3s = jax.random.normal(kr3, (1, 128, H, W), jnp.float32)  # conv_out16 analogue
    keys = jax.random.normal(kk, (num_objects, keydim // 2, H, W), jnp.float32)
    values = jax.random.normal(kv, (num_objects, keydim // 2, H, W), jnp.float32)
    keys3 = jax.random.normal(kk3, (num_objects, keydim // 2, H, W), jnp.float32)
    values3 = jax.random.normal(kv3, (num_objects, keydim // 2, H, W), jnp.float32)

    logit, mem1, qv1, mem2, qv2, psd = model.segment_core(
        r4s, r3s, keys, values, keys3, values3, num_objects)
    jax.block_until_ready(logit)

    # --- verification against pure-JAX references ---
    k4_ref = conv3x3_ref(r4s, model.KV_Q_r41.wk, model.KV_Q_r41.bk)
    v4_ref = conv3x3_ref(r4s, model.KV_Q_r41.wv, model.KV_Q_r41.bv)
    k4e_ref = jnp.broadcast_to(k4_ref, (num_objects,) + k4_ref.shape[1:])
    mem1_ref = memory_ref(keys, values, k4e_ref)
    k4_pal, v4_pal = model.KV_Q_r41(r4s)

    assert jnp.allclose(k4_pal.astype(jnp.float32), k4_ref, rtol=2e-2, atol=2e-2)
    assert jnp.allclose(v4_pal.astype(jnp.float32), v4_ref, rtol=2e-2, atol=2e-2)
    assert jnp.allclose(mem1, mem1_ref, rtol=2e-2, atol=2e-2)
    assert jnp.allclose(logit, soft_agg_ref(psd, num_objects), rtol=2e-2, atol=2e-2)

    # exercise the memory-tiled online-softmax path explicitly (grid (no,2,2))
    # and check it against the reference as well.
    v4e = jnp.broadcast_to(v4_pal, (num_objects,) + v4_pal.shape[1:])
    mem1_tiled, _ = memory_read(keys, values, k4_pal, v4e,
                                query_tile=128, mem_tile=128)
    jax.block_until_ready(mem1_tiled)
    assert jnp.allclose(mem1_tiled, mem1_ref, rtol=2e-2, atol=2e-2)

    # soft_aggregation with absent objects (max_obj > num_objects) exercises
    # the in-kernel constant fill of the padded rows.
    logit_pad = soft_aggregation(psd, num_objects + 2)
    assert jnp.allclose(logit_pad, soft_agg_ref(psd, num_objects + 2),
                        rtol=2e-2, atol=2e-2)

    print("KERNEL_OK")
</pallas_src>

<mosaic_0001>
module attributes {stable_mosaic.version = 11 : i64} {
  func.func @_conv3x3_fused_kernel(%arg0: i32, %arg1: i32, %arg2: memref<1x18x18x128xbf16, #tpu.memory_space<vmem>>, %arg3: memref<3x384x128xbf16, #tpu.memory_space<vmem>>, %arg4: memref<1x128xf32, #tpu.memory_space<vmem>>, %arg5: memref<1x256x128xbf16, #tpu.memory_space<vmem>>) attributes {dimension_semantics = [#tpu.dimension_semantics<parallel>, #tpu.dimension_semantics<parallel>], iteration_bounds = array<i64: 1, 1>, scalar_prefetch = 0 : i64, scratch_operands = 0 : i64, tpu.core_type = #tpu.core_type<tc>, window_params = [{transform_indices = @transform_0, window_bounds = array<i64: 1, 18, 18, 128>}, {pipeline_mode = #tpu.pipeline_mode<synchronous>, transform_indices = @transform_1, window_bounds = array<i64: 3, 384, 128>}, {pipeline_mode = #tpu.pipeline_mode<synchronous>, transform_indices = @transform_2, window_bounds = array<i64: 1, 128>}, {transform_indices = @transform_3, window_bounds = array<i64: 1, 256, 128>}]} {
    %c16_i32 = arith.constant 16 : i32
    %0 = arith.muli %arg1, %c16_i32 : i32
    %1 = tpu.assume_multiple %0, 16 : i32
    %c0 = arith.constant 0 : index
    %2 = arith.index_cast %1 : i32 to index
    %c0_0 = arith.constant 0 : index
    %c0_1 = arith.constant 0 : index
    %3 = vector.load %arg2[%c0, %2, %c0_0, %c0_1] : memref<1x18x18x128xbf16, #tpu.memory_space<vmem>>, vector<1x18x18x128xbf16>
    %4 = vector.shape_cast %3 : vector<1x18x18x128xbf16> to vector<18x18x128xbf16>
    %5 = vector.extract_strided_slice %4 {offsets = [0, 0, 0], sizes = [16, 18, 128], strides = [1, 1, 1]} : vector<18x18x128xbf16> to vector<16x18x128xbf16>
    %6 = vector.extract_strided_slice %4 {offsets = [1, 0, 0], sizes = [16, 18, 128], strides = [1, 1, 1]} : vector<18x18x128xbf16> to vector<16x18x128xbf16>
    %7 = vector.extract_strided_slice %4 {offsets = [2, 0, 0], sizes = [16, 18, 128], strides = [1, 1, 1]} : vector<18x18x128xbf16> to vector<16x18x128xbf16>
    %8 = tpu.concatenate %5, %6, %7 in 2 : vector<16x18x128xbf16>, vector<16x18x128xbf16>, vector<16x18x128xbf16> -> vector<16x18x384xbf16>
    %c0_2 = arith.constant 0 : index
    %c0_3 = arith.constant 0 : index
    %9 = vector.load %arg4[%c0_2, %c0_3] : memref<1x128xf32, #tpu.memory_space<vmem>>, vector<1x128xf32>
    %10 = vector.shape_cast %9 : vector<1x128xf32> to vector<128xf32>
    %11 = vector.shape_cast %10 : vector<128xf32> to vector<1x128xf32>
    %12 = vector.broadcast %11 : vector<1x128xf32> to vector<256x128xf32>
    %13 = vector.extract_strided_slice %8 {offsets = [0, 0, 0], sizes = [16, 16, 384], strides = [1, 1, 1]} : vector<16x18x384xbf16> to vector<16x16x384xbf16>
    %14 = vector.shape_cast %13 : vector<16x16x384xbf16> to vector<256x384xbf16>
    %c0_4 = arith.constant 0 : index
    %c0_5 = arith.constant 0 : index
    %c0_6 = arith.constant 0 : index
    %15 = vector.load %arg3[%c0_4, %c0_5, %c0_6] : memref<3x384x128xbf16, #tpu.memory_space<vmem>>, vector<1x384x128xbf16>
    %16 = vector.shape_cast %15 : vector<1x384x128xbf16> to vector<384x128xbf16>
    %cst = arith.constant dense<0.000000e+00> : vector<256x128xf32>
    %17 = tpu.matmul %14, %16, %cst {dimension_numbers = #tpu.dot_dimension_numbers<[1], [0], [0], [1], [0, 0, 1, 1], [], []>} : vector<256x384xbf16>, vector<384x128xbf16>, vector<256x128xf32> -> vector<256x128xf32>
    %18 = arith.addf %12, %17 : vector<256x128xf32>
    %19 = vector.extract_strided_slice %8 {offsets = [0, 1, 0], sizes = [16, 16, 384], strides = [1, 1, 1]} : vector<16x18x384xbf16> to vector<16x16x384xbf16>
    %20 = vector.shape_cast %19 : vector<16x16x384xbf16> to vector<256x384xbf16>
    %c1 = arith.constant 1 : index
    %c0_7 = arith.constant 0 : index
    %c0_8 = arith.constant 0 : index
    %21 = vector.load %arg3[%c1, %c0_7, %c0_8] : memref<3x384x128xbf16, #tpu.memory_space<vmem>>, vector<1x384x128xbf16>
    %22 = vector.shape_cast %21 : vector<1x384x128xbf16> to vector<384x128xbf16>
    %cst_9 = arith.constant dense<0.000000e+00> : vector<256x128xf32>
    %23 = tpu.matmul %20, %22, %cst_9 {dimension_numbers = #tpu.dot_dimension_numbers<[1], [0], [0], [1], [0, 0, 1, 1], [], []>} : vector<256x384xbf16>, vector<384x128xbf16>, vector<256x128xf32> -> vector<256x128xf32>
    %24 = arith.addf %18, %23 : vector<256x128xf32>
    %25 = vector.extract_strided_slice %8 {offsets = [0, 2, 0], sizes = [16, 16, 384], strides = [1, 1, 1]} : vector<16x18x384xbf16> to vector<16x16x384xbf16>
    %26 = vector.shape_cast %25 : vector<16x16x384xbf16> to vector<256x384xbf16>
    %c2 = arith.constant 2 : index
    %c0_10 = arith.constant 0 : index
    %c0_11 = arith.constant 0 : index
    %27 = vector.load %arg3[%c2, %c0_10, %c0_11] : memref<3x384x128xbf16, #tpu.memory_space<vmem>>, vector<1x384x128xbf16>
    %28 = vector.shape_cast %27 : vector<1x384x128xbf16> to vector<384x128xbf16>
    %cst_12 = arith.constant dense<0.000000e+00> : vector<256x128xf32>
    %29 = tpu.matmul %26, %28, %cst_12 {dimension_numbers = #tpu.dot_dimension_numbers<[1], [0], [0], [1], [0, 0, 1, 1], [], []>} : vector<256x384xbf16>, vector<384x128xbf16>, vector<256x128xf32> -> vector<256x128xf32>
    %30 = arith.addf %24, %29 : vector<256x128xf32>
    %31 = arith.truncf %30 : vector<256x128xf32> to vector<256x128xbf16>
    %c0_13 = arith.constant 0 : index
    %c0_14 = arith.constant 0 : index
    %c0_15 = arith.constant 0 : index
    %32 = vector.load %arg5[%c0_13, %c0_14, %c0_15] : memref<1x256x128xbf16, #tpu.memory_space<vmem>>, vector<1x256x128xbf16>
    %33 = vector.shape_cast %32 : vector<1x256x128xbf16> to vector<256x128xbf16>
    %34 = vector.shape_cast %31 : vector<256x128xbf16> to vector<1x256x128xbf16>
    tpu.vector_store %arg5[%c0_13, %c0_14, %c0_15], %34 {strides = array<i32>} : memref<1x256x128xbf16, #tpu.memory_space<vmem>>, vector<1x256x128xbf16>,
    return
  }
  func.func @transform_0(%arg0: i32, %arg1: i32) -> (i32, i32, i32, i32) {
    %c0_i32 = arith.constant 0 : i32
    %c0_i32_0 = arith.constant 0 : i32
    %c0_i32_1 = arith.constant 0 : i32
    %c0_i32_2 = arith.constant 0 : i32
    return %arg0, %c0_i32, %c0_i32_0, %c0_i32_1 : i32, i32, i32, i32
  }
  func.func @transform_1(%arg0: i32, %arg1: i32) -> (i32, i32, i32) {
    %c0_i32 = arith.constant 0 : i32
    %c0_i32_0 = arith.constant 0 : i32
    %c0_i32_1 = arith.constant 0 : i32
    %c0_i32_2 = arith.constant 0 : i32
    return %c0_i32, %c0_i32_0, %c0_i32_1 : i32, i32, i32
  }
  func.func @transform_2(%arg0: i32, %arg1: i32) -> (i32, i32) {
    %c0_i32 = arith.constant 0 : i32
    %c0_i32_0 = arith.constant 0 : i32
    %c0_i32_1 = arith.constant 0 : i32
    return %c0_i32, %c0_i32_0 : i32, i32
  }
  func.func @transform_3(%arg0: i32, %arg1: i32) -> (i32, i32, i32) {
    %c0_i32 = arith.constant 0 : i32
    %c0_i32_0 = arith.constant 0 : i32
    return %arg0, %arg1, %c0_i32 : i32, i32, i32
  }
}

</mosaic_0001>

<bundles_post_ra>
// kernel: tpu_custom_call.1
= control target key start
LH: loop header
LB: loop body
LE: loop exit
PB: predicated region body
PF: predicated region fallthrough
CT: control target
= control target key end

     0   :  { %8 = vsyncpa [#allocation3], 0  ;;  %s4275_s0 = inlined_call_operand.hbm [shape: bf16[1,18,18,128], index: 0, kind: input, shape index: {}]   ;;  %s4276_s1 = inlined_call_operand.hbm [shape: bf16[3,384,128], index: 1, kind: input, shape index: {}]   ;;  %s4277_s2 = inlined_call_operand.vmem [shape: f32[1,128], index: 2, kind: input, shape index: {}]   ;;  %s4278_s3 = inlined_call_operand.hbm [shape: bf16[1,256,128], index: 3, kind: output, shape index: {}]  }
   0x1   :  { %9 = vsyncpa [#allocation6], 0 }
   0x2   :  { %10 = vsyncpa [#allocation4], 0  ;;  %s3420_s12 = smov [#allocation2]  }
   0x3   :  { %s16_s13 = sshll.u32 %s3420_s12, 4  ;;  %s17_s13 = int_to_ptr.vmem [resolvable:$true] %s16_s13 }
   0x4   :  { %s3362_s14 = scalar_lea.vmem %s17_s13, 3456  ;;  %p3367_p1 = scmp.lt.s32.totalorder %s17_s13, %s17_s13 }
   0x5   :  { %p3363_p0 = scmp.ne.s32.totalorder %s17_s13, %s3362_s14  ;;  %p3368_p2 = scmp.lt.s32.totalorder %s3362_s14, %s3362_s14 }
   0x7   :  { %p3369_p3 = por %p3368_p2, %p3367_p1 }
   0x9   :  { %p3370_p4 = pnand %p3369_p3, %p3363_p0 }
   0xb   :  { %3373 = shalt.err (!%p3370_p4)
}
   0xc   :  { %s3421_s15 = smov 64   ;;  %s3422_s16 = smov 4  }
   0xd   :  { %22 = dma.hbm_to_vmem [thread:$0]  %s4275_s0, 3456, %s17_s13, [#allocation3], %s3421_s15, %s3421_s15, %s3422_s16  }
   0xe   :  { %s3423_s19 = smov [#allocation5]  }
   0xf   :  { %s28_s20 = sshll.u32 %s3423_s19, 4  ;;  %s29_s20 = int_to_ptr.vmem [resolvable:$true] %s28_s20 }
  0x10   :  { %s3382_s21 = scalar_lea.vmem %s29_s20, 9216  ;;  %p3387_p6 = scmp.lt.s32.totalorder %s29_s20, %s29_s20 }
  0x11   :  { %p3383_p5 = scmp.ne.s32.totalorder %s29_s20, %s3382_s21  ;;  %p3388_p7 = scmp.lt.s32.totalorder %s3382_s21, %s3382_s21 }
  0x13   :  { %p3389_p8 = por %p3388_p7, %p3387_p6 }
  0x15   :  { %p3390_p9 = pnand %p3389_p8, %p3383_p5 }
  0x17   :  { %3393 = shalt.err (!%p3390_p9)
}
  0x18   :  { %34 = dma.hbm_to_vmem [thread:$0]  %s4276_s1, 9216, %s29_s20, [#allocation6], %s3421_s15, %s3421_s15, %s3422_s16  }
  0x19   :  { %3414 = dma.done.wait [#allocation3], 3456  }
  0x1a   :  { %3415 = vsyncadd [#allocation3], 4294963840 }
  0x1b   :  { %3416 = dma.done.wait [#allocation6], 9216  }
  0x1c   :  { %3417 = vsyncadd [#allocation6], 4294958080  ;;  %v3238_v0 = vld [vmem:[#allocation5 + $0x78] sm:$0xff]   ;;  %v3240_v2 = vld [vmem:[#allocation5 + $0x70] sm:$0xff]   ;;  %vm1599_vm0 = vcmask 1046528  }
  0x1d   :  { %v3239_v1 = vld [vmem:[#allocation5 + $0x38] sm:$0xff]   ;;  %2665 = vmatprep.subr.bf16.mxu0 %v3238_v0  ;;  %3217 = vmatprep.subr.bf16.mxu1 %v3238_v0  ;;  %v3241_v3 = vld [vmem:[#allocation5 + $0x30] sm:$0xff]   ;;  %v3242_v4 = vld [vmem:[#allocation5 + $0x68] sm:$0xff]   ;;  %vm817_vm1 = vsmask.f32 7424 }
  0x1e   :  { %2666 = vmatpush3.bf16.msra.mxu0 %v3239_v1  ;;  %3225 = vmatpush3.bf16.msra.mxu1 %v3239_v1  ;;  %v3243_v5 = vld [vmem:[#allocation5 + $0x28] sm:$0xff]   ;;  %v3244_v6 = vld [vmem:[#allocation5 + $0x60] sm:$0xff]   ;;  %v3246_v8 = vld [vmem:[#allocation5 + $0x58] sm:$0xff]  }
  0x1f   :  { %2667 = vmatprep.subr.bf16.mxu0 %v3240_v2  ;;  %3218 = vmatprep.subr.bf16.mxu1 %v3240_v2  ;;  %v3245_v7 = vld [vmem:[#allocation5 + $0x20] sm:$0xff]   ;;  %v3247_v9 = vld [vmem:[#allocation5 + $0x18] sm:$0xff]   ;;  %v3248_v10 = vld [vmem:[#allocation5 + $0x50] sm:$0xff]  }
  0x20   :  { %v3457_v11 = vld [vmem:[#allocation2 + $0xc] sm:$0xff]   ;;  %v3459_v12 = vld [vmem:[#allocation2 + $0x9c] sm:$0xff]   ;;  %v3475_v29 = vld [vmem:[#allocation2 + $0x24] sm:$0xff]  }
  0x21   :  { %495 = vmatprep.mubr.bf16.mxu0 %v3457_v11  ;;  %v3249_v13 = vld [vmem:[#allocation5 + $0x10] sm:$0xff]   ;;  %v3250_v14 = vld [vmem:[#allocation5 + $0x48] sm:$0xff]   ;;  %591 = vmatprep.mubr.bf16.mxu1 %v3459_v12  ;;  %v3252_v16 = vld [vmem:[#allocation5 + $0x40] sm:$0xff]  }
  0x22   :  { %2668 = vmatpush3.bf16.msra.mxu0 %v3241_v3  ;;  %3226 = vmatpush3.bf16.msra.mxu1 %v3241_v3  ;;  %v3251_v15 = vld [vmem:[#allocation5 + $0x8] sm:$0xff]   ;;  %v3253_v17 = vld [vmem:[#allocation5] sm:$0xff]   ;;  %v3258_v18 = vld [vmem:[#allocation5 + $0xb8] sm:$0xff]  }
  0x23   :  { %2669 = vmatprep.subr.bf16.mxu0 %v3242_v4  ;;  %3219 = vmatprep.subr.bf16.mxu1 %v3242_v4  ;;  %v3463_v19 = vld [vmem:[#allocation2] sm:$0xff]   ;;  %v3259_v20 = vld [vmem:[#allocation5 + $0x178] sm:$0xff]   ;;  %v3260_v22 = vld [vmem:[#allocation5 + $0xb0] sm:$0xff]   ;;  %v833_v4 = vshll.u32 %v3457_v11, 16 }
  0x24   :  { %v3465_v21 = vld [vmem:[#allocation2 + $0x90] sm:$0xff]   ;;  %v3467_v23 = vld [vmem:[#allocation2 + $0x18] sm:$0xff]   ;;  %v3469_v24 = vld [vmem:[#allocation2 + $0xa8] sm:$0xff]  }
  0x25   :  { %v3265_v25 = vld [vmem:[#allocation5 + $0x170] sm:$0xff]   ;;  %v3263_v26 = vld [vmem:[#allocation5 + $0xa8] sm:$0xff]   ;;  %v3264_v28 = vld [vmem:[#allocation5 + $0xa0] sm:$0xff]  }
  0x26   :  { %2670 = vmatpush3.bf16.msra.mxu0 %v3243_v5  ;;  %3227 = vmatpush3.bf16.msra.mxu1 %v3243_v5  ;;  %v3273_v27 = vld [vmem:[#allocation5 + $0x168] sm:$0xff]   ;;  %v3477_v30 = vld [vmem:[#allocation2 + $0xb4] sm:$0xff]   ;;  %v3269_v33 = vld [vmem:[#allocation5 + $0x90] sm:$0xff]  }
  0x27   :  { %2671 = vmatprep.subr.bf16.mxu0 %v3244_v6  ;;  %3220 = vmatprep.subr.bf16.mxu1 %v3244_v6  ;;  %v3278_v31 = vld [vmem:[#allocation5 + $0x160] sm:$0xff]   ;;  %v3268_v32 = vld [vmem:[#allocation5 + $0x98] sm:$0xff]   ;;  %v3485_v35 = vld [vmem:[#allocation2 + $0xc0] sm:$0xff]   ;;  %v845_v6 = vshll.u32 %v3467_v23, 16 }
  0x28   :  { %v3483_v34 = vld [vmem:[#allocation2 + $0x30] sm:$0xff]   ;;  %v3272_v37 = vld [vmem:[#allocation5 + $0x88] sm:$0xff]   ;;  %v3290_v38 = vld [vmem:[#allocation5 + $0x150] sm:$0xff]  }
  0x29   :  { %v3283_v36 = vld [vmem:[#allocation5 + $0x158] sm:$0xff]   ;;  %v3491_v39 = vld [vmem:[#allocation2 + $0x3c] sm:$0xff]   ;;  %v3497_v44 = vld [vmem:[#allocation2 + $0x48] sm:$0xff]  }
  0x2a   :  { %2672 = vmatpush3.bf16.msra.mxu0 %v3245_v7  ;;  %3228 = vmatpush3.bf16.msra.mxu1 %v3245_v7  ;;  %v3274_v40 = vld [vmem:[#allocation5 + $0x80] sm:$0xff]   ;;  %v3295_v41 = vld [vmem:[#allocation5 + $0x148] sm:$0xff]   ;;  %v3276_v42 = vld [vmem:[#allocation5 + $0x138] sm:$0xff]  }
  0x2b   :  { %2673 = vmatprep.subr.bf16.mxu0 %v3246_v8  ;;  %3221 = vmatprep.subr.bf16.mxu1 %v3246_v8  ;;  %v3277_v43 = vld [vmem:[#allocation5 + $0xf8] sm:$0xff]   ;;  %v3280_v45 = vld [vmem:[#allocation5 + $0x130] sm:$0xff]   ;;  %v3300_v46 = vld [vmem:[#allocation5 + $0x140] sm:$0xff]   ;;  %v831_v8 = vshrl.u32 %v3457_v11, 16 }
  0x2c   :  { %v3281_v47 = vld [vmem:[#allocation5 + $0xf0] sm:$0xff]   ;;  %v3308_v48 = vld [vmem:[#allocation5 + $0x1f8] sm:$0xff]   ;;  %v3284_v49 = vld [vmem:[#allocation5 + $0x128] sm:$0xff]  }
  0x2d   :  { %v3503_v50 = vld [vmem:[#allocation2 + $0x54] sm:$0xff]   ;;  %v3285_v51 = vld [vmem:[#allocation5 + $0xe8] sm:$0xff]   ;;  %v3296_v57 = vld [vmem:[#allocation5 + $0x110] sm:$0xff]  }
  0x2e   :  { %2674 = vmatpush3.bf16.msra.mxu0 %v3247_v9  ;;  %3229 = vmatpush3.bf16.msra.mxu1 %v3247_v9  ;;  %v3288_v52 = vld [vmem:[#allocation5 + $0x120] sm:$0xff]   ;;  %v3293_v54 = vld [vmem:[#allocation5 + $0x118] sm:$0xff]   ;;  %v3509_v55 = vld [vmem:[#allocation2 + $0x60] sm:$0xff]   ;;  %v835_v9 = vrot.slane %v833_v4, 1 }
  0x2f   :  { %2675 = vmatprep.subr.bf16.mxu0 %v3248_v10  ;;  %3222 = vmatprep.subr.bf16.mxu1 %v3248_v10  ;;  %v3289_v53 = vld [vmem:[#allocation5 + $0xe0] sm:$0xff]   ;;  %v3294_v56 = vld [vmem:[#allocation5 + $0xd8] sm:$0xff]   ;;  %v3297_v58 = vld [vmem:[#allocation5 + $0xd0] sm:$0xff]   ;;  %v843_v10 = vshrl.u32 %v3467_v23, 16 }
  0x30   :  { %v3298_v59 = vld [vmem:[#allocation5 + $0x108] sm:$0xff]   ;;  %v3515_v60 = vld [vmem:[#allocation2 + $0x6c] sm:$0xff]   ;;  %v3517_v61 = vld [vmem:[#allocation2 + $0x78] sm:$0xff]  }
  0x31   :  { %v3299_v62 = vld [vmem:[#allocation5 + $0xc8] sm:$0xff]   ;;  %v3302_v63 = vld [vmem:[#allocation5 + $0x100] sm:$0xff]   ;;  %v3523_v1 = vld [vmem:[#allocation5 + $0x238] sm:$0xff]  }
  0x32   :  { %2676 = vmatpush3.bf16.msra.mxu0 %v3249_v13  ;;  %3230 = vmatpush3.bf16.msra.mxu1 %v3249_v13  ;;  %v3303_v0 = vld [vmem:[#allocation5 + $0xc0] sm:$0xff]   ;;  %v3525_v2 = vld [vmem:[#allocation2 + $0x84] sm:$0xff]   ;;  %v3534_v3 = vld [vmem:[#allocation2 + $0x14] ss:$0 sps:$4 sm:$0x11]   ;;  %v1621_v13 = vrot.slane %v3503_v50, 1 }
  0x33   :  { %2677 = vmatprep.subr.bf16.mxu0 %v3250_v14  ;;  %3223 = vmatprep.subr.bf16.mxu1 %v3250_v14  ;;  %v3539_v5 = vld [vmem:[#allocation2 + $0x20] ss:$0 sps:$4 sm:$0x11]   ;;  %v3542_v7 = vld [vmem:[#allocation2 + $0x5c] ss:$0 sps:$4 sm:$0x11]  }
  0x34   :  { %v1622_v14 = vrot.slane %v3542_v7, 1  ;;  %v3309_v4 = vld [vmem:[#allocation5 + $0x1b8] sm:$0xff]  }
  0x36   :  { %2678 = vmatpush3.bf16.msra.mxu0 %v3251_v15  ;;  %3231 = vmatpush3.bf16.msra.mxu1 %v3251_v15  ;;  %v838_v15 = vshll.u32 %v3534_v3, 16 }
  0x37   :  { %2679 = vmatprep.subr.bf16.mxu0 %v3252_v16  ;;  %3224 = vmatprep.subr.bf16.mxu1 %v3252_v16  ;;  %v847_v16 = vrot.slane %v845_v6, 1 }
  0x3a   :  { %2680 = vmatpush3.bf16.msra.mxu0 %v3253_v17  ;;  %3232 = vmatpush3.bf16.msra.mxu1 %v3253_v17  ;;  %v850_v17 = vshll.u32 %v3539_v5, 16 }
  0x3b   :  { %3073 = vmatprep.subr.bf16.mxu1 %v3258_v18  ;;  %3121 = vmatprep.subr.bf16.mxu0 %v3259_v20 }
  0x3d   :  { %496 = vmatmul.mubr.bf16.vlgmr.msra.gmra.mxu0 %v3463_v19  ;;  %592 = vmatmul.mubr.bf16.vlgmr.msra.gmra.mxu1 %v3465_v21 }
  0x3e   :  { %3074 = vmatpush3.bf16.msra.mxu1 %v3258_v18  ;;  %3122 = vmatpush3.bf16.msra.mxu0 %v3259_v20  ;;  %v3551_v18 = vsel %vm1599_vm0, %v1621_v13, %v1622_v14  ;;  %v857_v20 = vshll.u32 %v3475_v29, 16 }
  0x3f   :  { %3075 = vmatprep.subr.bf16.mxu1 %v3260_v22  ;;  %503 = vmatprep.mubr.bf16.mxu0 %v3467_v23 }
  0x40   :  { %599 = vmatprep.mubr.bf16.mxu1 %v3469_v24  ;;  %3123 = vmatprep.subr.bf16.mxu0 %v3265_v25 }
  0x42   :  { %3076 = vmatpush3.bf16.msra.mxu1 %v3260_v22  ;;  %3124 = vmatpush3.bf16.msra.mxu0 %v3265_v25  ;;  %v3559_v22 = vld [vmem:[#allocation2 + $0x8] ss:$0 sps:$4 sm:$0x11]   ;;  %v836_v25 = vor.u32 %v835_v9, %v831_v8  ;;  %v891_v9 = vshrl.u32 %v3497_v44, 16 }
  0x43   :  { %3077 = vmatprep.subr.bf16.mxu1 %v3263_v26  ;;  %3125 = vmatprep.subr.bf16.mxu0 %v3273_v27 }
  0x45   :  { %504 = vmatmul.mubr.bf16.gmra.mxu0 %v3457_v11  ;;  %600 = vmatmul.mubr.bf16.gmra.mxu1 %v3459_v12  ;;  %v821_v11 = vshll.u32 %v3463_v19, 16 }
  0x46   :  { %3078 = vmatpush3.bf16.msra.mxu1 %v3263_v26  ;;  %511 = vmatprep.mubr.bf16.mxu0 %v3475_v29  ;;  %v840_v26 = vrot.slane %v838_v15, 1  ;;  %v3313_v15 = vld [vmem:[#allocation5 + $0x1f0] sm:$0xff]  }
  0x47   :  { %3079 = vmatprep.subr.bf16.mxu1 %v3264_v28  ;;  %607 = vmatprep.mubr.bf16.mxu1 %v3477_v30 }
  0x48   :  { %3126 = vmatpush3.bf16.msra.mxu0 %v3273_v27  ;;  %v848_v27 = vor.u32 %v847_v16, %v843_v10  ;;  %v3319_v16 = vld [vmem:[#allocation5 + $0x230] sm:$0xff]  }
  0x49   :  { %3127 = vmatprep.subr.bf16.mxu0 %v3278_v31 }
  0x4a   :  { %3080 = vmatpush3.bf16.msra.mxu1 %v3264_v28  ;;  %v852_v28 = vrot.slane %v850_v17, 1 }
  0x4b   :  { %3081 = vmatprep.subr.bf16.mxu1 %v3268_v32 }
  0x4c   :  { %3128 = vmatpush3.bf16.msra.mxu0 %v3278_v31  ;;  %v3563_v31 = vld [vmem:[#allocation2 + $0x38] ss:$0 sps:$4 sm:$0x11]  }
  0x4d   :  { %512 = vmatmul.mubr.bf16.gmra.mxu0 %v3467_v23  ;;  %608 = vmatmul.mubr.bf16.gmra.mxu1 %v3469_v24 }
  0x4e   :  { %3082 = vmatpush3.bf16.msra.mxu1 %v3268_v32  ;;  %519 = vmatprep.mubr.bf16.mxu0 %v3483_v34  ;;  %v869_v32 = vshll.u32 %v3483_v34, 16 }
  0x4f   :  { %3083 = vmatprep.subr.bf16.mxu1 %v3269_v33  ;;  %615 = vmatprep.mubr.bf16.mxu1 %v3485_v35 }
  0x50   :  { %3129 = vmatprep.subr.bf16.mxu0 %v3283_v36 }
  0x51   :  { %3130 = vmatpush3.bf16.msra.mxu0 %v3283_v36  ;;  %v819_v36 = vshrl.u32 %v3463_v19, 16 }
  0x52   :  { %3084 = vmatpush3.bf16.msra.mxu1 %v3269_v33  ;;  %3131 = vmatprep.subr.bf16.mxu0 %v3290_v38  ;;  %v3566_v33 = vld [vmem:[#allocation2 + $0xcc] sm:$0xff]  }
  0x53   :  { %3085 = vmatprep.subr.bf16.mxu1 %v3272_v37 }
  0x55   :  { %520 = vmatmul.mubr.bf16.gmra.mxu0 %v3475_v29  ;;  %616 = vmatmul.mubr.bf16.gmra.mxu1 %v3477_v30 }
  0x56   :  { %3086 = vmatpush3.bf16.msra.mxu1 %v3272_v37  ;;  %527 = vmatprep.mubr.bf16.mxu0 %v3491_v39  ;;  %v823_v37 = vrot.slane %v821_v11, 1 }
  0x57   :  { %3087 = vmatprep.subr.bf16.mxu1 %v3274_v40  ;;  %3089 = vmatprep.mubr.bf16.mxu1 %v3467_v23  ;;  %v3561_v23 = vld [vmem:[#allocation2 + $0x2c] ss:$0 sps:$4 sm:$0x11]  }
  0x58   :  { %3132 = vmatpush3.bf16.msra.mxu0 %v3290_v38  ;;  %v826_v38 = vshll.u32 %v3559_v22, 16  ;;  %v824_v19 = vor.u32 %v823_v37, %v819_v36  ;;  %v3607_v36 = vld [vmem:[#allocation2 + $0x68] ss:$0 sps:$4 sm:$0x11]   ;;  %v3328_v37 = vld [vmem:[#allocation5 + $0x228] sm:$0xff]  }
  0x59   :  { %3133 = vmatprep.subr.bf16.mxu0 %v3295_v41 }
  0x5a   :  { %3088 = vmatpush3.bf16.msra.mxu1 %v3274_v40  ;;  %v855_v40 = vshrl.u32 %v3475_v29, 16 }
  0x5b   :  { %2801 = vmatprep.subr.bf16.mxu1 %v3276_v42  ;;  %v862_v42 = vshll.u32 %v3561_v23, 16 }
  0x5c   :  { %3134 = vmatpush3.bf16.msra.mxu0 %v3295_v41  ;;  %v859_v41 = vrot.slane %v857_v20, 1  ;;  %v3314_v20 = vld [vmem:[#allocation5 + $0x1b0] sm:$0xff]  }
  0x5d   :  { %528 = vmatmul.mubr.bf16.gmra.mxu0 %v3483_v34  ;;  %3090 = vmatmul.mubr.bf16.vlgmr.msra.gmra.mxu1 %v3475_v29 }
  0x5e   :  { %2802 = vmatpush3.bf16.msra.mxu1 %v3277_v43  ;;  %535 = vmatprep.mubr.bf16.mxu0 %v3497_v44  ;;  %v3573_v43 = vsel %vm817_vm1, %v836_v25, %v840_v26  ;;  %v905_v25 = vshll.u32 %v3503_v50, 16  ;;  %v917_v26 = vshll.u32 %v3509_v55, 16 }
  0x5f   :  { %3093 = vmatprep.mubr.bf16.mxu1 %v3483_v34  ;;  %2803 = vmatprep.subr.bf16.mxu1 %v3280_v45  ;;  %v3576_v45 = vsel %vm817_vm1, %v848_v27, %v852_v28 }
  0x60   :  { %3135 = vmatprep.subr.bf16.mxu0 %v3300_v46 }
  0x61   :  { %3136 = vmatpush3.bf16.msra.mxu0 %v3300_v46  ;;  %v867_v46 = vshrl.u32 %v3483_v34, 16 }
  0x62   :  { %2804 = vmatpush3.bf16.msra.mxu1 %v3281_v47  ;;  %2937 = vmatprep.subr.bf16.mxu0 %v3308_v48  ;;  %v871_v47 = vrot.slane %v869_v32, 1  ;;  %v874_v48 = vshll.u32 %v3563_v31, 16  ;;  %v3317_v32 = vld [vmem:[#allocation5 + $0x1e8] sm:$0xff]  }
  0x63   :  { %2805 = vmatprep.subr.bf16.mxu1 %v3284_v49  ;;  %v828_v49 = vrot.slane %v826_v38, 1  ;;  %v903_v38 = vshrl.u32 %v3503_v50, 16 }
  0x65   :  { %536 = vmatmul.mubr.bf16.gmra.mxu0 %v3491_v39  ;;  %3094 = vmatmul.mubr.bf16.gmra.mxu1 %v3491_v39 }
  0x66   :  { %543 = vmatprep.mubr.bf16.mxu0 %v3503_v50  ;;  %3097 = vmatprep.mubr.bf16.mxu1 %v3497_v44 }
  0x67   :  { %2806 = vmatpush3.bf16.msra.mxu1 %v3285_v51  ;;  %v860_v51 = vor.u32 %v859_v41, %v855_v40  ;;  %v907_v40 = vrot.slane %v905_v25, 1  ;;  %v910_v41 = vshll.u32 %v3542_v7, 16  ;;  %v3343_v25 = vld [vmem:[#allocation5 + $0x210] sm:$0xff]  }
  0x68   :  { %2807 = vmatprep.subr.bf16.mxu1 %v3288_v52  ;;  %v864_v52 = vrot.slane %v862_v42, 1 }
  0x69   :  { %v912_v7 = vrot.slane %v910_v41, 1  ;;  %v965_v41 = vshll.u32 %v3465_v21, 16 }
  0x6b   :  { %2808 = vmatpush3.bf16.msra.mxu1 %v3289_v53  ;;  %v3584_v53 = vld [vmem:[#allocation2 + $0x44] ss:$0 sps:$4 sm:$0x11]  }
  0x6c   :  { %2809 = vmatprep.subr.bf16.mxu1 %v3293_v54  ;;  %v881_v54 = vshll.u32 %v3491_v39, 16  ;;  %v886_v8 = vshll.u32 %v3584_v53, 16 }
  0x6d   :  { %544 = vmatmul.mubr.bf16.gmra.mxu0 %v3497_v44  ;;  %3098 = vmatmul.mubr.bf16.gmra.mxu1 %v3503_v50 }
  0x6e   :  { %551 = vmatprep.mubr.bf16.mxu0 %v3509_v55  ;;  %3101 = vmatprep.mubr.bf16.mxu1 %v3509_v55  ;;  %v883_v6 = vrot.slane %v881_v54, 1  ;;  %v888_v11 = vrot.slane %v886_v8, 1  ;;  %v929_v54 = vshll.u32 %v3515_v60, 16  ;;  %v927_v8 = vshrl.u32 %v3515_v60, 16 }
  0x6f   :  { %2810 = vmatpush3.bf16.msra.mxu1 %v3294_v56  ;;  %v3587_v56 = vld [vmem:[#allocation2 + $0x50] ss:$0 sps:$4 sm:$0x11]  }
  0x70   :  { %2811 = vmatprep.subr.bf16.mxu1 %v3296_v57  ;;  %v893_v57 = vshll.u32 %v3497_v44, 16  ;;  %v898_v13 = vshll.u32 %v3587_v56, 16 }
  0x72   :  { %v895_v10 = vrot.slane %v893_v57, 1  ;;  %v900_v28 = vrot.slane %v898_v13, 1 }
  0x73   :  { %2812 = vmatpush3.bf16.msra.mxu1 %v3297_v58  ;;  %v872_v58 = vor.u32 %v871_v47, %v867_v46  ;;  %v3318_v46 = vld [vmem:[#allocation5 + $0x1a8] sm:$0xff]   ;;  %v915_v47 = vshrl.u32 %v3509_v55, 16 }
  0x74   :  { %2813 = vmatprep.subr.bf16.mxu1 %v3298_v59  ;;  %v876_v59 = vrot.slane %v874_v48, 1  ;;  %v896_v27 = vor.u32 %v895_v10, %v891_v9  ;;  %v919_v48 = vrot.slane %v917_v26, 1  ;;  %v931_v9 = vrot.slane %v929_v54, 1 }
  0x75   :  { %552 = vmatmul.mubr.bf16.gmra.mxu0 %v3503_v50  ;;  %3102 = vmatmul.mubr.bf16.gmra.mxu1 %v3515_v60  ;;  %v908_v50 = vor.u32 %v907_v40, %v903_v38  ;;  %v3646_v40 = vld [vmem:[#allocation2 + $0x98] ss:$0 sps:$4 sm:$0x11]   ;;  %v967_v54 = vrot.slane %v965_v41, 1 }
  0x76   :  { %559 = vmatprep.mubr.bf16.mxu0 %v3515_v60  ;;  %3105 = vmatprep.mubr.bf16.mxu1 %v3517_v61  ;;  %v3599_v14 = vsel %vm817_vm1, %v872_v58, %v876_v59  ;;  %v3615_v42 = vsel %vm817_vm1, %v896_v27, %v900_v28  ;;  %v920_v57 = vor.u32 %v919_v48, %v915_v47  ;;  %v3323_v59 = vld [vmem:[#allocation5 + $0x1a0] sm:$0xff]   ;;  %v3643_v28 = vld [vmem:[#allocation2 + $0x8c] ss:$0 sps:$4 sm:$0x11]   ;;  %v3344_v47 = vld [vmem:[#allocation5 + $0x208] sm:$0xff]  }
  0x77   :  { %2814 = vmatpush3.bf16.msra.mxu1 %v3299_v62  ;;  %v879_v62 = vshrl.u32 %v3491_v39, 16  ;;  %v932_v26 = vor.u32 %v931_v9, %v927_v8  ;;  %v977_v8 = vshll.u32 %v3459_v12, 16  ;;  %v3683_v41 = vld [vmem:[#allocation2 + $0xbc] ss:$0 sps:$4 sm:$0x11]  }
  0x78   :  { %2815 = vmatprep.subr.bf16.mxu1 %v3302_v63  ;;  %v829_v63 = vsel %vm817_vm1, %v824_v19, %v828_v49  ;;  %v922_v19 = vshll.u32 %v3607_v36, 16  ;;  %v3322_v49 = vld [vmem:[#allocation5 + $0x1e0] sm:$0xff]  }
  0x79   :  { %v884_v17 = vor.u32 %v883_v6, %v879_v62  ;;  %v3626_v62 = vld [vmem:[#allocation2 + $0x80] ss:$0 sps:$4 sm:$0x11]   ;;  %v3630_v6 = vsel %vm817_vm1, %v908_v50, %v912_v7  ;;  %v963_v7 = vshrl.u32 %v3465_v21, 16 }
  0x7a   :  { %v924_v58 = vrot.slane %v922_v19, 1  ;;  %v951_v19 = vshrl.u32 %v3525_v2, 16 }
  0x7b   :  { %2816 = vmatpush3.bf16.msra.mxu1 %v3303_v0  ;;  %v3593_v0 = vsel %vm817_vm1, %v860_v51, %v864_v52  ;;  %v3337_v51 = vld [vmem:[#allocation5 + $0x220] sm:$0xff]   ;;  %v3623_v52 = vld [vmem:[#allocation2 + $0x74] ss:$0 sps:$4 sm:$0x11]   ;;  %v968_v9 = vor.u32 %v967_v54, %v963_v7  ;;  %v1006_v7 = vshll.u32 %v3683_v41, 16 }
  0x7c   :  { %3169 = vmatprep.subr.bf16.mxu1 %v3523_v1  ;;  %v934_v10 = vshll.u32 %v3623_v52, 16  ;;  %v3635_v13 = vsel %vm817_vm1, %v920_v57, %v924_v58  ;;  %v970_v57 = vshll.u32 %v3646_v40, 16  ;;  %v3336_v58 = vld [vmem:[#allocation5 + $0x188] sm:$0xff]  }
  0x7d   :  { %560 = vmatmul.mubr.bf16.gmra.mxu0 %v3509_v55  ;;  %3106 = vmatmul.mubr.bf16.gmra.mxu1 %v3525_v2 }
  0x7e   :  { %567 = vmatprep.mubr.bf16.mxu0 %v3517_v61  ;;  %3109 = vmatprep.mubr.bf16.mxu1 %v3465_v21  ;;  %v936_v27 = vrot.slane %v934_v10, 1  ;;  %v972_v10 = vrot.slane %v970_v57, 1  ;;  %v1011_v57 = vshrl.u32 %v3485_v35, 16 }
  0x80   :  { %v3650_v48 = vsel %vm817_vm1, %v932_v26, %v936_v27  ;;  %v3675_v26 = vsel %vm817_vm1, %v968_v9, %v972_v10  ;;  %v987_v27 = vshrl.u32 %v3469_v24, 16  ;;  %v1023_v10 = vshrl.u32 %v3566_v33, 16 }
  0x85   :  { %568 = vmatmul.mubr.bf16.gmra.mxu0 %v3515_v60  ;;  %3110 = vmatmul.mubr.bf16.gmra.mxu1 %v3459_v12 }
  0x86   :  { %575 = vmatprep.mubr.bf16.mxu0 %v3525_v2  ;;  %3113 = vmatprep.mubr.bf16.mxu1 %v3469_v24 }
  0x8d   :  { %576 = vmatmul.mubr.bf16.gmra.mxu0 %v3517_v61  ;;  %3114 = vmatmul.mubr.bf16.gmra.mxu1 %v3477_v30 }
  0x8e   :  { %583 = vmatprep.mubr.bf16.mxu0 %v3465_v21  ;;  %3117 = vmatprep.mubr.bf16.mxu1 %v3485_v35 }
  0x95   :  { %584 = vmatmul.mubr.bf16.gmra.mxu0 %v3525_v2  ;;  %3118 = vmatmul.mubr.bf16.gmra.mxu1 %v3566_v33 }
  0x96   :  { %1277 = vmatprep.mubr.bf16.mxu1 %v3573_v43  ;;  %3137 = vmatprep.mubr.bf16.mxu0 %v3576_v45 }
  0x9d   :  { %1278 = vmatmul.mubr.bf16.vlgmr.msra.gmra.mxu1 %v829_v63  ;;  %3138 = vmatmul.mubr.bf16.vlgmr.msra.gmra.mxu0 %v3593_v0  ;;  %v3326_v63 = vld [vmem:[#allocation5 + $0x1d8] sm:$0xff]  }
  0x9e   :  { %2938 = vmatpush3.bf16.msra.mxu0 %v3309_v4  ;;  %3170 = vmatpush3.bf16.msra.mxu1 %v3523_v1  ;;  %v3610_v1 = vsel %vm817_vm1, %v884_v17, %v888_v11  ;;  %v3342_v4 = vld [vmem:[#allocation5 + $0x218] sm:$0xff]   ;;  %v946_v17 = vshll.u32 %v3626_v62, 16 }
  0x9f   :  { %1285 = vmatprep.mubr.bf16.mxu1 %v3576_v45  ;;  %3141 = vmatprep.mubr.bf16.mxu0 %v3599_v14  ;;  %v3327_v11 = vld [vmem:[#allocation5 + $0x198] sm:$0xff]  }
  0xa0   :  { %2939 = vmatprep.subr.bf16.mxu0 %v3313_v15  ;;  %3171 = vmatprep.subr.bf16.mxu1 %v3319_v16  ;;  %v939_v15 = vshrl.u32 %v3517_v61, 16  ;;  %v948_v38 = vrot.slane %v946_v17, 1 }
  0xa2   :  { %2940 = vmatpush3.bf16.msra.mxu0 %v3314_v20  ;;  %3172 = vmatpush3.bf16.msra.mxu1 %v3319_v16  ;;  %v3331_v20 = vld [vmem:[#allocation5 + $0x1d0] sm:$0xff]  }
  0xa3   :  { %2941 = vmatprep.subr.bf16.mxu0 %v3317_v32  ;;  %3173 = vmatprep.subr.bf16.mxu1 %v3328_v37  ;;  %v953_v32 = vshll.u32 %v3525_v2, 16 }
  0xa5   :  { %1286 = vmatmul.mubr.bf16.gmra.mxu1 %v3573_v43  ;;  %3142 = vmatmul.mubr.bf16.gmra.mxu0 %v3610_v1  ;;  %v941_v43 = vshll.u32 %v3517_v61, 16 }
  0xa6   :  { %1293 = vmatprep.mubr.bf16.mxu1 %v3593_v0  ;;  %3145 = vmatprep.mubr.bf16.mxu0 %v3615_v42 }
  0xa7   :  { %2942 = vmatpush3.bf16.msra.mxu0 %v3318_v46  ;;  %3174 = vmatpush3.bf16.msra.mxu1 %v3328_v37  ;;  %v943_v16 = vrot.slane %v941_v43, 1  ;;  %v3335_v46 = vld [vmem:[#allocation5 + $0x1c8] sm:$0xff]   ;;  %v3345_v43 = vld [vmem:[#allocation5 + $0x200] sm:$0xff]  }
  0xa8   :  { %2943 = vmatprep.subr.bf16.mxu0 %v3322_v49  ;;  %3175 = vmatprep.subr.bf16.mxu1 %v3337_v51  ;;  %v955_v49 = vrot.slane %v953_v32, 1 }
  0xa9   :  { %v944_v37 = vor.u32 %v943_v16, %v939_v15  ;;  %v3666_v15 = vld [vmem:[#allocation2 + $0xb0] ss:$0 sps:$4 sm:$0x11]   ;;  %v989_v16 = vshll.u32 %v3469_v24, 16 }
  0xab   :  { %2944 = vmatpush3.bf16.msra.mxu0 %v3323_v59  ;;  %3176 = vmatpush3.bf16.msra.mxu1 %v3337_v51  ;;  %v958_v51 = vshll.u32 %v3643_v28, 16  ;;  %v3655_v50 = vsel %vm817_vm1, %v944_v37, %v948_v38  ;;  %v3340_v59 = vld [vmem:[#allocation5 + $0x1c0] sm:$0xff]   ;;  %v991_v32 = vrot.slane %v989_v16, 1  ;;  %v994_v37 = vshll.u32 %v3666_v15, 16 }
  0xac   :  { %2945 = vmatprep.subr.bf16.mxu0 %v3326_v63  ;;  %3177 = vmatprep.subr.bf16.mxu1 %v3342_v4  ;;  %v956_v63 = vor.u32 %v955_v49, %v951_v19  ;;  %v1013_v19 = vshll.u32 %v3485_v35, 16  ;;  %v999_v49 = vshrl.u32 %v3477_v30, 16 }
  0xad   :  { %1294 = vmatmul.mubr.bf16.gmra.mxu1 %v3576_v45  ;;  %3146 = vmatmul.mubr.bf16.gmra.mxu0 %v3630_v6  ;;  %v3332_v45 = vld [vmem:[#allocation5 + $0x190] sm:$0xff]   ;;  %v960_v21 = vrot.slane %v958_v51, 1  ;;  %v992_v24 = vor.u32 %v991_v32, %v987_v27  ;;  %v1604_v32 = vrot.slane %v3534_v3, 1 }
  0xae   :  { %1301 = vmatprep.mubr.bf16.mxu1 %v3599_v14  ;;  %3149 = vmatprep.mubr.bf16.mxu0 %v3635_v13 }
  0xaf   :  { %2946 = vmatpush3.bf16.msra.mxu0 %v3327_v11  ;;  %3178 = vmatpush3.bf16.msra.mxu1 %v3342_v4  ;;  %v3663_v4 = vld [vmem:[#allocation2 + $0xa4] ss:$0 sps:$4 sm:$0x11]   ;;  %v3670_v17 = vsel %vm817_vm1, %v956_v63, %v960_v21  ;;  %v975_v11 = vshrl.u32 %v3459_v12, 16  ;;  %v1025_v21 = vshll.u32 %v3566_v33, 16 }
  0xb0   :  { %2947 = vmatprep.subr.bf16.mxu0 %v3331_v20  ;;  %3179 = vmatprep.subr.bf16.mxu1 %v3343_v25  ;;  %v979_v20 = vrot.slane %v977_v8, 1  ;;  %v3703_v63 = vld [vmem:[#allocation2 + $0xd4] ss:$0 sps:$4 sm:$0x11]  }
  0xb1   :  { %v1030_v16 = vshll.u32 %v3703_v63, 16 }
  0xb2   :  { %v980_v12 = vor.u32 %v979_v20, %v975_v11 }
  0xb3   :  { %2948 = vmatpush3.bf16.msra.mxu0 %v3332_v45  ;;  %3180 = vmatpush3.bf16.msra.mxu1 %v3343_v25  ;;  %v982_v25 = vshll.u32 %v3663_v4, 16  ;;  %v1001_v45 = vshll.u32 %v3477_v30, 16  ;;  %v1032_v20 = vrot.slane %v1030_v16, 1  ;;  %v1624_v16 = vrot.slane %v3509_v55, 1 }
  0xb4   :  { %2949 = vmatprep.subr.bf16.mxu0 %v3335_v46  ;;  %3181 = vmatprep.subr.bf16.mxu1 %v3344_v47  ;;  %v996_v46 = vrot.slane %v994_v37, 1 }
  0xb5   :  { %1302 = vmatmul.mubr.bf16.gmra.mxu1 %v3593_v0  ;;  %3150 = vmatmul.mubr.bf16.gmra.mxu0 %v3650_v48  ;;  %v3341_v0 = vld [vmem:[#allocation5 + $0x180] sm:$0xff]   ;;  %v984_v38 = vrot.slane %v982_v25, 1  ;;  %v1003_v51 = vrot.slane %v1001_v45, 1  ;;  %v3346_v25 = vld [vmem:[#allocation2 + $0xc] sm:$0xff]   ;;  %v1601_v45 = vrot.slane %v3559_v22, 1  ;;  %v1610_v22 = vrot.slane %v3561_v23, 1 }
  0xb6   :  { %1309 = vmatprep.mubr.bf16.mxu1 %v3610_v1  ;;  %3153 = vmatprep.mubr.bf16.mxu0 %v3655_v50  ;;  %v3695_v54 = vsel %vm817_vm1, %v992_v24, %v996_v46  ;;  %v1603_v27 = vrot.slane %v3346_v25, 1  ;;  %v3348_v24 = vld [vmem:[#allocation2 + $0x18] sm:$0xff]   ;;  %v1616_v23 = vrot.slane %v3584_v53, 1 }
  0xb7   :  { %2950 = vmatpush3.bf16.msra.mxu0 %v3336_v58  ;;  %3182 = vmatpush3.bf16.msra.mxu1 %v3344_v47  ;;  %v3686_v47 = vld [vmem:[#allocation2 + $0xc8] ss:$0 sps:$4 sm:$0x11]   ;;  %v1015_v58 = vrot.slane %v1013_v19, 1  ;;  %v1004_v30 = vor.u32 %v1003_v51, %v999_v49  ;;  %v1606_v46 = vrot.slane %v3348_v24, 1  ;;  %v1607_v19 = vrot.slane %v3539_v5, 1 }
  0xb8   :  { %2951 = vmatprep.subr.bf16.mxu0 %v3340_v59  ;;  %3183 = vmatprep.subr.bf16.mxu1 %v3345_v43  ;;  %v1018_v59 = vshll.u32 %v3686_v47, 16  ;;  %v1612_v5 = vrot.slane %v3483_v34, 1  ;;  %v1618_v34 = vrot.slane %v3497_v44, 1 }
  0xb9   :  { %v1016_v8 = vor.u32 %v1015_v58, %v1011_v57  ;;  %v3727_v49 = vsel %vm1599_vm0, %v1606_v46, %v1607_v19  ;;  %v1627_v46 = vrot.slane %v3515_v60, 1  ;;  %v1628_v19 = vrot.slane %v3623_v52, 1 }
  0xba   :  { %v1020_v9 = vrot.slane %v1018_v59, 1 }
  0xbb   :  { %2952 = vmatpush3.bf16.msra.mxu0 %v3341_v0  ;;  %3184 = vmatpush3.bf16.msra.mxu1 %v3345_v43  ;;  %v1008_v43 = vrot.slane %v1006_v7, 1 }
  0xbc   :  { %v3712_v0 = vsel %vm817_vm1, %v1016_v8, %v1020_v9 }
  0xbd   :  { %1310 = vmatmul.mubr.bf16.gmra.mxu1 %v3599_v14  ;;  %3154 = vmatmul.mubr.bf16.gmra.mxu0 %v3670_v17  ;;  %v3690_v14 = vsel %vm817_vm1, %v980_v12, %v984_v38  ;;  %v3707_v35 = vsel %vm817_vm1, %v1004_v30, %v1008_v43  ;;  %v1605_v12 = vsel %vm1599_vm0, %v1603_v27, %v1604_v32 }
  0xbe   :  { %1317 = vmatprep.mubr.bf16.mxu1 %v3615_v42  ;;  %3157 = vmatprep.mubr.bf16.mxu0 %v3675_v26 }
  0xc5   :  { %1318 = vmatmul.mubr.bf16.gmra.mxu1 %v3610_v1  ;;  %3158 = vmatmul.mubr.bf16.gmra.mxu0 %v3690_v14  ;;  %v1027_v1 = vrot.slane %v1025_v21, 1 }
  0xc6   :  { %1325 = vmatprep.mubr.bf16.mxu1 %v3630_v6  ;;  %3161 = vmatprep.mubr.bf16.mxu0 %v3695_v54 }
  0xc7   :  { %v1028_v11 = vor.u32 %v1027_v1, %v1023_v10 }
  0xc9   :  { %v1033_v37 = vsel %vm817_vm1, %v1028_v11, %v1032_v20  ;;  %v1625_v11 = vrot.slane %v3607_v36, 1 }
  0xcd   :  { %1326 = vmatmul.mubr.bf16.gmra.mxu1 %v3615_v42  ;;  %3162 = vmatmul.mubr.bf16.gmra.mxu0 %v3707_v35  ;;  %v3347_v42 = vld [vmem:[#allocation2] sm:$0xff]  }
  0xce   :  { %1333 = vmatprep.mubr.bf16.mxu1 %v3635_v13  ;;  %3165 = vmatprep.mubr.bf16.mxu0 %v3712_v0  ;;  %v1600_v38 = vrot.slane %v3347_v42, 1 }
  0xd0   :  { %v1602_v3 = vsel %vm1599_vm0, %v1600_v38, %v1601_v45 }
  0xd5   :  { %1334 = vmatmul.mubr.bf16.gmra.mxu1 %v3630_v6  ;;  %3166 = vmatmul.mubr.bf16.gmra.mxu0 %v1033_v37  ;;  %v1609_v6 = vrot.slane %v3475_v29, 1  ;;  %v1615_v29 = vrot.slane %v3491_v39, 1 }
  0xd6   :  { %1341 = vmatprep.mubr.bf16.mxu1 %v3650_v48  ;;  %1897 = vmatprep.mubr.bf16.mxu0 %v1605_v12 }
  0xd7   :  { %v3735_v51 = vsel %vm1599_vm0, %v1609_v6, %v1610_v22 }
  0xdd   :  { %1342 = vmatmul.mubr.bf16.gmra.mxu1 %v3635_v13  ;;  %1898 = vmatmul.mubr.bf16.vlgmr.msra.gmra.mxu0 %v1602_v3  ;;  %v1613_v13 = vrot.slane %v3563_v31, 1  ;;  %v1619_v31 = vrot.slane %v3587_v56, 1 }
  0xde   :  { %1349 = vmatprep.mubr.bf16.mxu1 %v3655_v50  ;;  %1905 = vmatprep.mubr.bf16.mxu0 %v3727_v49 }
  0xdf   :  { %v3743_v7 = vsel %vm1599_vm0, %v1612_v5, %v1613_v13 }
  0xe5   :  { %1350 = vmatmul.mubr.bf16.gmra.mxu1 %v3650_v48  ;;  %1906 = vmatmul.mubr.bf16.gmra.mxu0 %v1605_v12  ;;  %v3752_v48 = vsel %vm1599_vm0, %v1615_v29, %v1616_v23 }
  0xe6   :  { %1357 = vmatprep.mubr.bf16.mxu1 %v3670_v17  ;;  %1913 = vmatprep.mubr.bf16.mxu0 %v3735_v51 }
  0xed   :  { %1358 = vmatmul.mubr.bf16.gmra.mxu1 %v3655_v50  ;;  %1914 = vmatmul.mubr.bf16.gmra.mxu0 %v3727_v49  ;;  %v3761_v50 = vsel %vm1599_vm0, %v1618_v34, %v1619_v31 }
  0xee   :  { %1365 = vmatprep.mubr.bf16.mxu1 %v3675_v26  ;;  %1921 = vmatprep.mubr.bf16.mxu0 %v3743_v7 }
  0xf5   :  { %1366 = vmatmul.mubr.bf16.gmra.mxu1 %v3670_v17  ;;  %1922 = vmatmul.mubr.bf16.gmra.mxu0 %v3735_v51 }
  0xf6   :  { %1373 = vmatprep.mubr.bf16.mxu1 %v3690_v14  ;;  %1929 = vmatprep.mubr.bf16.mxu0 %v3752_v48 }
  0xfd   :  { %v2681_v39 = vpop.f32.mrf.mxu0  ;;  %v2753_v53 = vpop.f32.mrf.mxu1  ;;  %1374 = vmatmul.mubr.bf16.gmra.mxu1 %v3675_v26  ;;  %1930 = vmatmul.mubr.bf16.gmra.mxu0 %v3743_v7 }
  0xfe   :  { %1381 = vmatprep.mubr.bf16.mxu1 %v3695_v54  ;;  %1937 = vmatprep.mubr.bf16.mxu0 %v3761_v50 }
  0xff   :  { %v2682_v17 = vpop.f32.mrf.mxu0  ;;  %v2754_v57 = vpop.f32.mrf.mxu1 }
 0x100   :  { %v3767_v58 = vadd.f32 %v2682_v17, %v2681_v39  ;;  %v3769_v44 = vadd.f32 %v2754_v57, %v2753_v53  ;;  %v1630_v39 = vrot.slane %v3517_v61, 1  ;;  %v1631_v53 = vrot.slane %v3626_v62, 1 }
 0x101   :  { %v2684_v56 = vpop.f32.mrf.mxu0  ;;  %v2756_v59 = vpop.f32.mrf.mxu1 }
 0x103   :  { %v2685_v30 = vpop.f32.mrf.mxu0  ;;  %v2757_v43 = vpop.f32.mrf.mxu1 }
 0x104   :  { %v3771_v21 = vadd.f32 %v2685_v30, %v2684_v56  ;;  %v3773_v8 = vadd.f32 %v2757_v43, %v2756_v59 }
 0x105   :  { %v2687_v26 = vpop.f32.mrf.mxu0  ;;  %v2759_v9 = vpop.f32.mrf.mxu1  ;;  %1382 = vmatmul.mubr.bf16.gmra.mxu1 %v3690_v14  ;;  %1938 = vmatmul.mubr.bf16.gmra.mxu0 %v3752_v48  ;;  %v3784_v14 = vsel %vm1599_vm0, %v1624_v16, %v1625_v11  ;;  %v1633_v16 = vrot.slane %v3525_v2, 1  ;;  %v1634_v11 = vrot.slane %v3643_v28, 1 }
 0x106   :  { %1389 = vmatprep.mubr.bf16.mxu1 %v3707_v35  ;;  %1945 = vmatprep.mubr.bf16.mxu0 %v3551_v18 }
 0x107   :  { %v2688_v10 = vpop.f32.mrf.mxu0  ;;  %v2760_v1 = vpop.f32.mrf.mxu1 }
 0x108   :  { %v2689_v20 = vadd.f32 %v2688_v10, %v2687_v26  ;;  %v3781_v25 = vadd.f32 %v2760_v1, %v2759_v9 }
 0x109   :  { %v2690_v27 = vpop.f32.mrf.mxu0  ;;  %v2762_v32 = vpop.f32.mrf.mxu1 }
 0x10b   :  { %v2691_v37 = vpop.f32.mrf.mxu0  ;;  %v2763_v12 = vpop.f32.mrf.mxu1 }
 0x10c   :  { %v2692_v42 = vadd.f32 %v2691_v37, %v2690_v27  ;;  %v3786_v38 = vadd.f32 %v2763_v12, %v2762_v32 }
 0x10d   :  { %v2693_v45 = vpop.f32.mrf.mxu0  ;;  %v2765_v24 = vpop.f32.mrf.mxu1  ;;  %1390 = vmatmul.mubr.bf16.gmra.mxu1 %v3695_v54  ;;  %1946 = vmatmul.mubr.bf16.gmra.mxu0 %v3761_v50  ;;  %v3797_v54 = vsel %vm1599_vm0, %v1627_v46, %v1628_v19  ;;  %v3349_v46 = vld [vmem:[#allocation2 + $0x90] sm:$0xff]  }
 0x10e   :  { %1397 = vmatprep.mubr.bf16.mxu1 %v3712_v0  ;;  %1953 = vmatprep.mubr.bf16.mxu0 %v3784_v14  ;;  %v1636_v19 = vrot.slane %v3349_v46, 1 }
 0x10f   :  { %v2694_v55 = vpop.f32.mrf.mxu0  ;;  %v2766_v36 = vpop.f32.mrf.mxu1 }
 0x110   :  { %v2695_v3 = vadd.f32 %v2694_v55, %v2693_v45  ;;  %v3794_v6 = vadd.f32 %v2766_v36, %v2765_v24  ;;  %v3830_v24 = vsel %vm1599_vm0, %v1633_v16, %v1634_v11 }
 0x111   :  { %v2696_v22 = vpop.f32.mrf.mxu0  ;;  %v2768_v5 = vpop.f32.mrf.mxu1 }
 0x113   :  { %v2697_v13 = vpop.f32.mrf.mxu0  ;;  %v2769_v29 = vpop.f32.mrf.mxu1 }
 0x114   :  { %v3799_v23 = vadd.f32 %v2697_v13, %v2696_v22  ;;  %v3801_v0 = vadd.f32 %v2769_v29, %v2768_v5  ;;  %v1637_v22 = vrot.slane %v3646_v40, 1 }
 0x115   :  { %v2699_v34 = vpop.f32.mrf.mxu0  ;;  %v2771_v31 = vpop.f32.mrf.mxu1  ;;  %1398 = vmatmul.mubr.bf16.gmra.mxu1 %v3707_v35  ;;  %1954 = vmatmul.mubr.bf16.gmra.mxu0 %v3551_v18  ;;  %v3812_v35 = vsel %vm1599_vm0, %v1630_v39, %v1631_v53 }
 0x116   :  { %1961 = vmatprep.mubr.bf16.mxu0 %v3797_v54  ;;  %3185 = vmatprep.mubr.bf16.mxu1 %v3727_v49 }
 0x117   :  { %v2700_v60 = vpop.f32.mrf.mxu0  ;;  %v2772_v52 = vpop.f32.mrf.mxu1 }
 0x118   :  { %v2701_v17 = vadd.f32 %v2700_v60, %v2699_v34  ;;  %v3809_v57 = vadd.f32 %v2772_v52, %v2771_v31  ;;  %v1638_v60 = vsel %vm1599_vm0, %v1636_v19, %v1637_v22 }
 0x119   :  { %v2702_v56 = vpop.f32.mrf.mxu0  ;;  %v2774_v59 = vpop.f32.mrf.mxu1 }
 0x11b   :  { %v2703_v30 = vpop.f32.mrf.mxu0  ;;  %v2775_v43 = vpop.f32.mrf.mxu1 }
 0x11c   :  { %v2704_v26 = vadd.f32 %v2703_v30, %v2702_v56  ;;  %v3814_v9 = vadd.f32 %v2775_v43, %v2774_v59  ;;  %v3350_v56 = vld [vmem:[#allocation2 + $0x9c] sm:$0xff]   ;;  %v1640_v30 = vrot.slane %v3663_v4, 1 }
 0x11d   :  { %v2705_v49 = vpop.f32.mrf.mxu0  ;;  %v3091_v10 = vpop.f32.mrf.mxu1  ;;  %1962 = vmatmul.mubr.bf16.gmra.mxu0 %v3784_v14  ;;  %3186 = vmatmul.mubr.bf16.vlgmr.msra.gmra.mxu1 %v3735_v51  ;;  %v1639_v59 = vrot.slane %v3350_v56, 1 }
 0x11e   :  { %v3818_v61 = vadd.f32 %v3091_v10, %v2689_v20  ;;  %1969 = vmatprep.mubr.bf16.mxu0 %v3812_v35  ;;  %3189 = vmatprep.mubr.bf16.mxu1 %v3743_v7 }
 0x11f   :  { %v2706_v62 = vpop.f32.mrf.mxu0  ;;  %v658_v1 = vpop.f32.mrf.mxu1 }
 0x120   :  { %v2707_v27 = vadd.f32 %v2706_v62, %v2705_v49  ;;  %v3825_v32 = vadd.f32 %v3767_v58, %v658_v1  ;;  %v1641_v1 = vsel %vm1599_vm0, %v1639_v59, %v1640_v30 }
 0x121   :  { %v2708_v37 = vpop.f32.mrf.mxu0  ;;  %v3092_v12 = vpop.f32.mrf.mxu1 }
 0x122   :  { %v3827_v45 = vadd.f32 %v3092_v12, %v2692_v42  ;;  %v3351_v12 = vld [vmem:[#allocation2 + $0xa8] sm:$0xff]  }
 0x123   :  { %v2709_v51 = vpop.f32.mrf.mxu0  ;;  %v661_v20 = vpop.f32.mrf.mxu1 }
 0x124   :  { %v2710_v7 = vadd.f32 %v2709_v51, %v2708_v37  ;;  %v3833_v55 = vadd.f32 %v3771_v21, %v661_v20  ;;  %v1642_v51 = vrot.slane %v3351_v12, 1  ;;  %v1643_v20 = vrot.slane %v3666_v15, 1 }
 0x125   :  { %v2711_v2 = vpop.f32.mrf.mxu0  ;;  %v3095_v36 = vpop.f32.mrf.mxu1  ;;  %1970 = vmatmul.mubr.bf16.gmra.mxu0 %v3797_v54  ;;  %3190 = vmatmul.mubr.bf16.gmra.mxu1 %v3752_v48 }
 0x126   :  { %v3837_v28 = vadd.f32 %v3095_v36, %v2701_v17  ;;  %1977 = vmatprep.mubr.bf16.mxu0 %v3830_v24  ;;  %3193 = vmatprep.mubr.bf16.mxu1 %v3761_v50 }
 0x127   :  { %v2712_v58 = vpop.f32.mrf.mxu0  ;;  %v674_v42 = vpop.f32.mrf.mxu1 }
 0x128   :  { %v2713_v21 = vadd.f32 %v2712_v58, %v2711_v2  ;;  %v3842_v5 = vadd.f32 %v2695_v3, %v674_v42 }
 0x129   :  { %v2714_v13 = vpop.f32.mrf.mxu0  ;;  %v3096_v29 = vpop.f32.mrf.mxu1 }
 0x12a   :  { %v3844_v34 = vadd.f32 %v3096_v29, %v2704_v26 }
 0x12b   :  { %v2715_v48 = vpop.f32.mrf.mxu0  ;;  %v677_v31 = vpop.f32.mrf.mxu1 }
 0x12c   :  { %v2716_v52 = vadd.f32 %v2715_v48, %v2714_v13  ;;  %v3848_v50 = vadd.f32 %v3799_v23, %v677_v31  ;;  %v3352_v31 = vld [vmem:[#allocation2 + $0xb4] sm:$0xff]  }
 0x12d   :  { %v2717_v39 = vpop.f32.mrf.mxu0  ;;  %v3099_v53 = vpop.f32.mrf.mxu1  ;;  %1978 = vmatmul.mubr.bf16.gmra.mxu0 %v3812_v35  ;;  %3194 = vmatmul.mubr.bf16.gmra.mxu1 %v3551_v18 }
 0x12e   :  { %v3852_v40 = vadd.f32 %v3099_v53, %v2713_v21  ;;  %1985 = vmatprep.mubr.bf16.mxu0 %v1638_v60  ;;  %3197 = vmatprep.mubr.bf16.mxu1 %v3784_v14 }
 0x12f   :  { %v2718_v3 = vpop.f32.mrf.mxu0  ;;  %v690_v17 = vpop.f32.mrf.mxu1 }
 0x130   :  { %v2719_v43 = vadd.f32 %v2718_v3, %v2717_v39  ;;  %v3856_v23 = vadd.f32 %v2707_v27, %v690_v17  ;;  %v1646_v39 = vrot.slane %v3683_v41, 1 }
 0x131   :  { %v2720_v26 = vpop.f32.mrf.mxu0  ;;  %v3100_v49 = vpop.f32.mrf.mxu1 }
 0x132   :  { %v3858_v10 = vadd.f32 %v3100_v49, %v2716_v52  ;;  %v1645_v52 = vrot.slane %v3352_v31, 1 }
 0x133   :  { %v2721_v62 = vpop.f32.mrf.mxu0  ;;  %v693_v18 = vpop.f32.mrf.mxu1 }
 0x134   :  { %v2722_v16 = vadd.f32 %v2721_v62, %v2720_v26  ;;  %v3861_v11 = vadd.f32 %v2710_v7, %v693_v18  ;;  %v3353_v18 = vld [vmem:[#allocation2 + $0xc0] sm:$0xff]  }
 0x135   :  { %v2723_v14 = vpop.f32.mrf.mxu0  ;;  %v3103_v37 = vpop.f32.mrf.mxu1  ;;  %1986 = vmatmul.mubr.bf16.gmra.mxu0 %v3830_v24  ;;  %3198 = vmatmul.mubr.bf16.gmra.mxu1 %v3797_v54  ;;  %v1644_v54 = vsel %vm1599_vm0, %v1642_v51, %v1643_v20 }
 0x136   :  { %1993 = vmatprep.mubr.bf16.mxu0 %v1641_v1  ;;  %3201 = vmatprep.mubr.bf16.mxu1 %v3812_v35 }
 0x137   :  { %v2724_v4 = vpop.f32.mrf.mxu0  ;;  %v706_v27 = vpop.f32.mrf.mxu1 }
 0x138   :  { %v2725_v2 = vadd.f32 %v2724_v4, %v2723_v14  ;;  %v3867_v36 = vadd.f32 %v2719_v43, %v706_v27  ;;  %v1647_v43 = vsel %vm1599_vm0, %v1645_v52, %v1646_v39  ;;  %v1649_v14 = vrot.slane %v3686_v47, 1 }
 0x139   :  { %v2726_v7 = vpop.f32.mrf.mxu0  ;;  %v3104_v58 = vpop.f32.mrf.mxu1  ;;  %v1651_v47 = vrot.slane %v3566_v33, 1 }
 0x13a   :  { %v3869_v42 = vadd.f32 %v3103_v37, %v2725_v2 }
 0x13b   :  { %v2727_v46 = vpop.f32.mrf.mxu0  ;;  %v709_v19 = vpop.f32.mrf.mxu1 }
 0x13c   :  { %v2728_v22 = vadd.f32 %v2727_v46, %v2726_v7  ;;  %v3872_v21 = vadd.f32 %v2722_v16, %v709_v19  ;;  %v1648_v16 = vrot.slane %v3353_v18, 1 }
 0x13d   :  { %v2729_v35 = vpop.f32.mrf.mxu0  ;;  %v3107_v13 = vpop.f32.mrf.mxu1  ;;  %1994 = vmatmul.mubr.bf16.gmra.mxu0 %v1638_v60  ;;  %3202 = vmatmul.mubr.bf16.gmra.mxu1 %v3830_v24 }
 0x13e   :  { %v3875_v15 = vadd.f32 %v3104_v58, %v2728_v22  ;;  %2001 = vmatprep.mubr.bf16.mxu0 %v1644_v54  ;;  %3205 = vmatprep.mubr.bf16.mxu1 %v1638_v60  ;;  %v1650_v2 = vsel %vm1599_vm0, %v1648_v16, %v1649_v14  ;;  %v1652_v22 = vrot.slane %v3703_v63, 1 }
 0x13f   :  { %v2730_v29 = vpop.f32.mrf.mxu0  ;;  %v722_v48 = vpop.f32.mrf.mxu1 }
 0x140   :  { %v2731_v53 = vadd.f32 %v2730_v29, %v2729_v35 }
 0x141   :  { %v2732_v3 = vpop.f32.mrf.mxu0  ;;  %v3108_v17 = vpop.f32.mrf.mxu1 }
 0x142   :  { %v3878_v56 = vadd.f32 %v2731_v53, %v722_v48 }
 0x143   :  { %v2733_v59 = vpop.f32.mrf.mxu0  ;;  %v725_v30 = vpop.f32.mrf.mxu1 }
 0x144   :  { %v2734_v24 = vadd.f32 %v2733_v59, %v2732_v3 }
 0x145   :  { %v2735_v26 = vpop.f32.mrf.mxu0  ;;  %v3111_v49 = vpop.f32.mrf.mxu1  ;;  %2002 = vmatmul.mubr.bf16.gmra.mxu0 %v1641_v1  ;;  %3206 = vmatmul.mubr.bf16.gmra.mxu1 %v1641_v1 }
 0x146   :  { %v3881_v60 = vadd.f32 %v2734_v24, %v725_v30  ;;  %2009 = vmatprep.mubr.bf16.mxu0 %v1647_v43  ;;  %3209 = vmatprep.mubr.bf16.mxu1 %v1644_v54 }
 0x147   :  { %v2736_v62 = vpop.f32.mrf.mxu0  ;;  %v738_v41 = vpop.f32.mrf.mxu1 }
 0x148   :  { %v2737_v37 = vadd.f32 %v2736_v62, %v2735_v26 }
 0x149   :  { %v2738_v4 = vpop.f32.mrf.mxu0  ;;  %v3112_v27 = vpop.f32.mrf.mxu1 }
 0x14a   :  { %v3884_v12 = vadd.f32 %v3107_v13, %v2737_v37 }
 0x14b   :  { %v2739_v51 = vpop.f32.mrf.mxu0  ;;  %v741_v20 = vpop.f32.mrf.mxu1 }
 0x14c   :  { %v2740_v1 = vadd.f32 %v2739_v51, %v2738_v4 }
 0x14d   :  { %v2741_v7 = vpop.f32.mrf.mxu0  ;;  %v3115_v58 = vpop.f32.mrf.mxu1  ;;  %2010 = vmatmul.mubr.bf16.gmra.mxu0 %v1644_v54  ;;  %3210 = vmatmul.mubr.bf16.gmra.mxu1 %v1647_v43 }
 0x14e   :  { %v3887_v46 = vadd.f32 %v3108_v17, %v2740_v1  ;;  %v3890_v19 = vadd.f32 %v3115_v58, %v3781_v25  ;;  %2017 = vmatprep.mubr.bf16.mxu0 %v1650_v2  ;;  %3213 = vmatprep.mubr.bf16.mxu1 %v1650_v2  ;;  %v1653_v25 = vsel %vm1599_vm0, %v1651_v47, %v1652_v22 }
 0x14f   :  { %v2742_v35 = vpop.f32.mrf.mxu0  ;;  %v754_v13 = vpop.f32.mrf.mxu1 }
 0x150   :  { %v2743_v29 = vadd.f32 %v2742_v35, %v2741_v7  ;;  %v3895_v48 = vadd.f32 %v3769_v44, %v754_v13 }
 0x151   :  { %v2744_v31 = vpop.f32.mrf.mxu0  ;;  %v3116_v54 = vpop.f32.mrf.mxu1 }
 0x152   :  { %v3897_v52 = vadd.f32 %v2743_v29, %v738_v41  ;;  %v3900_v39 = vadd.f32 %v3116_v54, %v3786_v38 }
 0x153   :  { %v2745_v53 = vpop.f32.mrf.mxu0  ;;  %v757_v3 = vpop.f32.mrf.mxu1 }
 0x154   :  { %v2746_v33 = vadd.f32 %v2745_v53, %v2744_v31  ;;  %v3904_v63 = vadd.f32 %v3773_v8, %v757_v3 }
 0x155   :  { %v2747_v17 = vpop.f32.mrf.mxu0  ;;  %v3119_v59 = vpop.f32.mrf.mxu1  ;;  %2018 = vmatmul.mubr.bf16.gmra.mxu0 %v1647_v43  ;;  %3214 = vmatmul.mubr.bf16.gmra.mxu1 %v1653_v25 }
 0x156   :  { %v3906_v44 = vadd.f32 %v2746_v33, %v741_v20  ;;  %v3909_v30 = vadd.f32 %v3119_v59, %v3809_v57 }
 0x157   :  { %v2748_v24 = vpop.f32.mrf.mxu0  ;;  %v770_v38 = vpop.f32.mrf.mxu1 }
 0x158   :  { %v2749_v26 = vadd.f32 %v2748_v24, %v2747_v17  ;;  %v3912_v62 = vadd.f32 %v3794_v6, %v770_v38 }
 0x159   :  { %v2750_v41 = vpop.f32.mrf.mxu0  ;;  %v3120_v18 = vpop.f32.mrf.mxu1 }
 0x15a   :  { %v3914_v16 = vadd.f32 %v3111_v49, %v2749_v26  ;;  %v3917_v8 = vadd.f32 %v3120_v18, %v3814_v9  ;;  %v3927_v49 = vld [vmem:[%s4277_s2] ss:$0 sm:$0xff]  ;;  %s3424_s2 = smov [#allocation7]  }
 0x15b   :  { %v2751_v43 = vpop.f32.mrf.mxu0  ;;  %v773_v14 = vpop.f32.mrf.mxu1  ;;  %v785_v58 = vadd.f32 %v3927_v49, %v3825_v32  ;;  %v786_v31 = vadd.f32 %v3927_v49, %v3833_v55  ;;  %v787_v32 = vadd.f32 %v3927_v49, %v3818_v61  ;;  %v788_v55 = vadd.f32 %v3927_v49, %v3827_v45  ;;  %s2384_s24 = sshll.u32 %s3424_s2, 4  ;;  %s2385_s24 = int_to_ptr.vmem [resolvable:$true] %s2384_s24 }
 0x15c   :  { %v2752_v37 = vadd.f32 %v2751_v43, %v2750_v41  ;;  %v3920_v4 = vadd.f32 %v3801_v0, %v773_v14  ;;  %v789_v61 = vadd.f32 %v3927_v49, %v3842_v5  ;;  %v790_v45 = vadd.f32 %v3927_v49, %v3848_v50  ;;  %s3394_s25 = scalar_lea.vmem %s2385_s24, 2048  ;;  %p3399_p11 = scmp.lt.s32.totalorder %s2385_s24, %s2385_s24 }
 0x15d   :  { %v2817_v57 = vpop.f32.mrf.mxu1  ;;  %v3139_v51 = vpop.f32.mrf.mxu0  ;;  %p3395_p10 = scmp.ne.s32.totalorder %s2385_s24, %s3394_s25  ;;  %p3400_p12 = scmp.lt.s32.totalorder %s3394_s25, %s3394_s25 }
 0x15e   :  { %v3922_v20 = vadd.f32 %v3112_v27, %v2752_v37 }
 0x15f   :  { %v2818_v2 = vpop.f32.mrf.mxu1  ;;  %v1440_v6 = vpop.f32.mrf.mxu0  ;;  %p3401_p13 = por %p3400_p12, %p3399_p11 }
 0x160   :  { %v2819_v1 = vadd.f32 %v2818_v2, %v2817_v57 }
 0x161   :  { %v2820_v9 = vpop.f32.mrf.mxu1  ;;  %v3140_v7 = vpop.f32.mrf.mxu0  ;;  %p3402_p0 = pnand %p3401_p13, %p3395_p10 }
 0x162   :  { %v1441_v47 = vadd.f32 %v2819_v1, %v1440_v6 }
 0x163   :  { %v2821_v0 = vpop.f32.mrf.mxu1  ;;  %v1443_v22 = vpop.f32.mrf.mxu0 }
 0x164   :  { %v3931_v35 = vadd.f32 %v1441_v47, %v785_v58  ;;  %v2822_v27 = vadd.f32 %v2821_v0, %v2820_v9 }
 0x165   :  { %v2823_v13 = vpop.f32.mrf.mxu1  ;;  %v3143_v29 = vpop.f32.mrf.mxu0 }
 0x166   :  { %v1444_v54 = vadd.f32 %v2822_v27, %v1443_v22 }
 0x167   :  { %v2824_v25 = vpop.f32.mrf.mxu1  ;;  %v1456_v53 = vpop.f32.mrf.mxu0 }
 0x168   :  { %v3935_v3 = vadd.f32 %v1444_v54, %v786_v31  ;;  %v2825_v33 = vadd.f32 %v2824_v25, %v2823_v13 }
 0x169   :  { %v2826_v17 = vpop.f32.mrf.mxu1  ;;  %v3144_v59 = vpop.f32.mrf.mxu0 }
 0x16a   :  { %v1449_v24 = vadd.f32 %v3139_v51, %v2825_v33 }
 0x16b   :  { %v2827_v38 = vpop.f32.mrf.mxu1  ;;  %v1459_v26 = vpop.f32.mrf.mxu0 }
 0x16c   :  { %v2828_v41 = vadd.f32 %v2827_v38, %v2826_v17  ;;  %v3939_v18 = vadd.f32 %v1449_v24, %v787_v32 }
 0x16d   :  { %v2829_v43 = vpop.f32.mrf.mxu1  ;;  %v3147_v14 = vpop.f32.mrf.mxu0 }
 0x16e   :  { %v1452_v37 = vadd.f32 %v3140_v7, %v2828_v41 }
 0x16f   :  { %v2830_v57 = vpop.f32.mrf.mxu1  ;;  %v1472_v2 = vpop.f32.mrf.mxu0 }
 0x170   :  { %v2831_v6 = vadd.f32 %v2830_v57, %v2829_v43  ;;  %v3943_v1 = vadd.f32 %v1452_v37, %v788_v55 }
 0x171   :  { %v2832_v9 = vpop.f32.mrf.mxu1  ;;  %v3148_v58 = vpop.f32.mrf.mxu0 }
 0x172   :  { %v1457_v51 = vadd.f32 %v2831_v6, %v1456_v53  ;;  %v791_v53 = vadd.f32 %v3927_v49, %v3837_v28 }
 0x173   :  { %v2833_v47 = vpop.f32.mrf.mxu1  ;;  %v1475_v0 = vpop.f32.mrf.mxu0 }
 0x174   :  { %v2834_v22 = vadd.f32 %v2833_v47, %v2832_v9  ;;  %v3947_v27 = vadd.f32 %v1457_v51, %v789_v61  ;;  %v793_v47 = vadd.f32 %v3927_v49, %v3856_v23 }
 0x175   :  { %v2835_v13 = vpop.f32.mrf.mxu1  ;;  %v3949_v31 = vpop.f32.mrf.mxu0 }
 0x176   :  { %v1460_v7 = vadd.f32 %v2834_v22, %v1459_v26  ;;  %v792_v26 = vadd.f32 %v3927_v49, %v3844_v34 }
 0x177   :  { %v2836_v54 = vpop.f32.mrf.mxu1  ;;  %v1488_v25 = vpop.f32.mrf.mxu0 }
 0x178   :  { %v2837_v33 = vadd.f32 %v2836_v54, %v2835_v13  ;;  %v3953_v17 = vadd.f32 %v1460_v7, %v790_v45 }
 0x179   :  { %v2838_v32 = vpop.f32.mrf.mxu1  ;;  %v3955_v5 = vpop.f32.mrf.mxu0 }
 0x17a   :  { %v1465_v24 = vadd.f32 %v3143_v29, %v2837_v33  ;;  %v794_v33 = vadd.f32 %v3927_v49, %v3861_v11 }
 0x17b   :  { %v2839_v38 = vpop.f32.mrf.mxu1  ;;  %v1491_v41 = vpop.f32.mrf.mxu0 }
 0x17c   :  { %v2840_v43 = vadd.f32 %v2839_v38, %v2838_v32  ;;  %v3959_v55 = vadd.f32 %v1465_v24, %v791_v53 }
 0x17d   :  { %v2841_v37 = vpop.f32.mrf.mxu1  ;;  %v3961_v50 = vpop.f32.mrf.mxu0 }
 0x17e   :  { %v1468_v57 = vadd.f32 %v3144_v59, %v2840_v43 }
 0x17f   :  { %v2842_v6 = vpop.f32.mrf.mxu1  ;;  %v3965_v9 = vpop.f32.mrf.mxu0 }
 0x180   :  { %v2843_v61 = vadd.f32 %v2842_v6, %v2841_v37  ;;  %v3967_v51 = vadd.f32 %v1468_v57, %v792_v26  ;;  %v795_v37 = vadd.f32 %v3927_v49, %v3852_v40 }
 0x181   :  { %v2844_v28 = vpop.f32.mrf.mxu1  ;;  %v3969_v29 = vpop.f32.mrf.mxu0 }
 0x182   :  { %v1473_v22 = vadd.f32 %v2843_v61, %v1472_v2 }
 0x183   :  { %v2845_v13 = vpop.f32.mrf.mxu1  ;;  %v3973_v45 = vpop.f32.mrf.mxu0 }
 0x184   :  { %v2846_v7 = vadd.f32 %v2845_v13, %v2844_v28  ;;  %v3975_v54 = vadd.f32 %v1473_v22, %v793_v47  ;;  %v796_v47 = vadd.f32 %v3927_v49, %v3858_v10 }
 0x185   :  { %v2847_v34 = vpop.f32.mrf.mxu1  ;;  %v3977_v59 = vpop.f32.mrf.mxu0 }
 0x186   :  { %v1476_v32 = vadd.f32 %v2846_v7, %v1475_v0 }
 0x187   :  { %v2848_v53 = vpop.f32.mrf.mxu1  ;;  %v3981_v24 = vpop.f32.mrf.mxu0 }
 0x188   :  { %v2849_v38 = vadd.f32 %v2848_v53, %v2847_v34  ;;  %v3983_v43 = vadd.f32 %v1476_v32, %v794_v33  ;;  %v797_v32 = vadd.f32 %v3927_v49, %v3867_v36 }
 0x189   :  { %v2850_v23 = vpop.f32.mrf.mxu1  ;;  %v3985_v2 = vpop.f32.mrf.mxu0 }
 0x18a   :  { %v1481_v26 = vadd.f32 %v3147_v14, %v2849_v38 }
 0x18b   :  { %v2851_v57 = vpop.f32.mrf.mxu1  ;;  %v3989_v6 = vpop.f32.mrf.mxu0 }
 0x18c   :  { %v2852_v61 = vadd.f32 %v2851_v57, %v2850_v23  ;;  %v3991_v28 = vadd.f32 %v1481_v26, %v795_v37  ;;  %v798_v57 = vadd.f32 %v3927_v49, %v3872_v21 }
 0x18d   :  { %v2853_v11 = vpop.f32.mrf.mxu1  ;;  %v3993_v0 = vpop.f32.mrf.mxu0 }
 0x18e   :  { %v1484_v22 = vadd.f32 %v3148_v58, %v2852_v61 }
 0x18f   :  { %v2854_v13 = vpop.f32.mrf.mxu1  ;;  %v3997_v7 = vpop.f32.mrf.mxu0 }
 0x190   :  { %v2855_v34 = vadd.f32 %v2854_v13, %v2853_v11  ;;  %v3999_v33 = vadd.f32 %v1484_v22, %v796_v47 }
 0x191   :  { %v2856_v40 = vpop.f32.mrf.mxu1  ;;  %v4001_v14 = vpop.f32.mrf.mxu0 }
 0x192   :  { %v1489_v53 = vadd.f32 %v2855_v34, %v1488_v25  ;;  %v799_v34 = vadd.f32 %v3927_v49, %v3869_v42 }
 0x193   :  { %v2857_v38 = vpop.f32.mrf.mxu1  ;;  %v4005_v23 = vpop.f32.mrf.mxu0 }
 0x194   :  { %v2858_v37 = vadd.f32 %v2857_v38, %v2856_v40  ;;  %v4007_v26 = vadd.f32 %v1489_v53, %v797_v32 }
 0x195   :  { %v2859_v10 = vpop.f32.mrf.mxu1  ;;  %v4009_v58 = vpop.f32.mrf.mxu0 }
 0x196   :  { %4279 = vst [vmem:[#allocation11_spill] sm:$0xff] %v4007_v26  ;;  %v1492_v61 = vadd.f32 %v2858_v37, %v1491_v41 }
 0x197   :  { %v2860_v11 = vpop.f32.mrf.mxu1  ;;  %v4013_v47 = vpop.f32.mrf.mxu0 }
 0x198   :  { %v2861_v22 = vadd.f32 %v2860_v11, %v2859_v10  ;;  %v4015_v13 = vadd.f32 %v1492_v61, %v798_v57  ;;  %v800_v10 = vadd.f32 %v3927_v49, %v3875_v15 }
 0x199   :  { %v2862_v36 = vpop.f32.mrf.mxu1  ;;  %v4017_v25 = vpop.f32.mrf.mxu0 }
 0x19a   :  { %4280 = vst [vmem:[#allocation12_spill] sm:$0xff] %v4015_v13  ;;  %v1497_v40 = vadd.f32 %v3949_v31, %v2861_v22 }
 0x19b   :  { %v2863_v32 = vpop.f32.mrf.mxu1  ;;  %v4022_v53 = vpop.f32.mrf.mxu0 }
 0x19c   :  { %v2864_v38 = vadd.f32 %v2863_v32, %v2862_v36  ;;  %v4024_v21 = vadd.f32 %v1497_v40, %v799_v34  ;;  %v801_v36 = vadd.f32 %v3927_v49, %v3878_v56 }
 0x19d   :  { %v2865_v41 = vpop.f32.mrf.mxu1  ;;  %v2953_v37 = vpop.f32.mrf.mxu0 }
 0x19e   :  { %v1500_v57 = vadd.f32 %v3955_v5, %v2864_v38 }
 0x19f   :  { %v2866_v61 = vpop.f32.mrf.mxu1  ;;  %v2954_v11 = vpop.f32.mrf.mxu0 }
 0x1a0   :  { %v2867_v13 = vadd.f32 %v2866_v61, %v2865_v41  ;;  %v4029_v26 = vadd.f32 %v2954_v11, %v2953_v37  ;;  %v4031_v42 = vadd.f32 %v1500_v57, %v800_v10  ;;  %v802_v37 = vadd.f32 %v3927_v49, %v3881_v60 }
 0x1a1   :  { %v2868_v31 = vpop.f32.mrf.mxu1  ;;  %v4033_v22 = vpop.f32.mrf.mxu0 }
 0x1a2   :  { %v1505_v34 = vadd.f32 %v2867_v13, %v3965_v9 }
 0x1a3   :  { %v2869_v40 = vpop.f32.mrf.mxu1  ;;  %v4038_v32 = vpop.f32.mrf.mxu0 }
 0x1a4   :  { %v2870_v15 = vadd.f32 %v2869_v40, %v2868_v31  ;;  %v4040_v5 = vadd.f32 %v1505_v34, %v801_v36  ;;  %v803_v31 = vadd.f32 %v3927_v49, %v3884_v12 }
 0x1a5   :  { %v2871_v38 = vpop.f32.mrf.mxu1  ;;  %v4042_v41 = vpop.f32.mrf.mxu0 }
 0x1a6   :  { %4281 = vst [vmem:[#allocation13_spill] sm:$0xff] %v4040_v5  ;;  %v1508_v10 = vadd.f32 %v2870_v15, %v3973_v45 }
 0x1a7   :  { %v2872_v57 = vpop.f32.mrf.mxu1  ;;  %v4047_v61 = vpop.f32.mrf.mxu0 }
 0x1a8   :  { %v2873_v56 = vadd.f32 %v2872_v57, %v2871_v38  ;;  %v4049_v11 = vadd.f32 %v1508_v10, %v802_v37  ;;  %v804_v38 = vadd.f32 %v3927_v49, %v3887_v46 }
 0x1a9   :  { %v2874_v9 = vpop.f32.mrf.mxu1  ;;  %v4051_v13 = vpop.f32.mrf.mxu0 }
 0x1aa   :  { %4282 = vst [vmem:[#allocation14_spill] sm:$0xff] %v4049_v11  ;;  %v1513_v36 = vadd.f32 %v3961_v50, %v2873_v56 }
 0x1ab   :  { %v2875_v34 = vpop.f32.mrf.mxu1  ;;  %v4056_v40 = vpop.f32.mrf.mxu0 }
 0x1ac   :  { %v2876_v60 = vadd.f32 %v2875_v34, %v2874_v9  ;;  %v4058_v5 = vadd.f32 %v1513_v36, %v803_v31  ;;  %v805_v9 = vadd.f32 %v3927_v49, %v3897_v52 }
 0x1ad   :  { %v2877_v45 = vpop.f32.mrf.mxu1  ;;  %v4060_v15 = vpop.f32.mrf.mxu0 }
 0x1ae   :  { %4283 = vst [vmem:[#allocation15_spill] sm:$0xff] %v4058_v5  ;;  %v1516_v37 = vadd.f32 %v3969_v29, %v2876_v60 }
 0x1af   :  { %v2878_v10 = vpop.f32.mrf.mxu1  ;;  %v4065_v57 = vpop.f32.mrf.mxu0 }
 0x1b0   :  { %v2879_v12 = vadd.f32 %v2878_v10, %v2877_v45  ;;  %v4067_v11 = vadd.f32 %v1516_v37, %v804_v38  ;;  %v806_v45 = vadd.f32 %v3927_v49, %v3906_v44 }
 0x1b1   :  { %v2880_v50 = vpop.f32.mrf.mxu1  ;;  %v4069_v56 = vpop.f32.mrf.mxu0 }
 0x1b2   :  { %4284 = vst [vmem:[#allocation16_spill] sm:$0xff] %v4067_v11  ;;  %v1521_v31 = vadd.f32 %v2879_v12, %v3981_v24 }
 0x1b3   :  { %v2881_v36 = vpop.f32.mrf.mxu1  ;;  %v4074_v34 = vpop.f32.mrf.mxu0 }
 0x1b4   :  { %v2882_v46 = vadd.f32 %v2881_v36, %v2880_v50  ;;  %v4076_v5 = vadd.f32 %v1521_v31, %v805_v9  ;;  %v807_v50 = vadd.f32 %v3927_v49, %v3914_v16 }
 0x1b5   :  { %v2883_v29 = vpop.f32.mrf.mxu1  ;;  %v4078_v60 = vpop.f32.mrf.mxu0 }
 0x1b6   :  { %4285 = vst [vmem:[#allocation17_spill] sm:$0xff] %v4076_v5  ;;  %v1524_v38 = vadd.f32 %v2882_v46, %v3989_v6 }
 0x1b7   :  { %v2884_v37 = vpop.f32.mrf.mxu1  ;;  %v4083_v10 = vpop.f32.mrf.mxu0 }
 0x1b8   :  { %v2885_v52 = vadd.f32 %v2884_v37, %v2883_v29  ;;  %v4085_v11 = vadd.f32 %v1524_v38, %v806_v45  ;;  %v808_v29 = vadd.f32 %v3927_v49, %v3922_v20 }
 0x1b9   :  { %v2886_v24 = vpop.f32.mrf.mxu1  ;;  %v4087_v12 = vpop.f32.mrf.mxu0 }
 0x1ba   :  { %4286 = vst [vmem:[#allocation18_spill] sm:$0xff] %v4085_v11  ;;  %v1529_v9 = vadd.f32 %v3977_v59, %v2885_v52 }
 0x1bb   :  { %v2887_v31 = vpop.f32.mrf.mxu1  ;;  %v4092_v36 = vpop.f32.mrf.mxu0 }
 0x1bc   :  { %v2888_v44 = vadd.f32 %v2887_v31, %v2886_v24  ;;  %v4094_v5 = vadd.f32 %v1529_v9, %v807_v50  ;;  %v809_v24 = vadd.f32 %v3927_v49, %v3895_v48 }
 0x1bd   :  { %v2889_v6 = vpop.f32.mrf.mxu1  ;;  %v4096_v46 = vpop.f32.mrf.mxu0 }
 0x1be   :  { %4287 = vst [vmem:[#allocation19_spill] sm:$0xff] %v4094_v5  ;;  %v1532_v45 = vadd.f32 %v3985_v2, %v2888_v44 }
 0x1bf   :  { %v2890_v38 = vpop.f32.mrf.mxu1  ;;  %v4101_v37 = vpop.f32.mrf.mxu0 }
 0x1c0   :  { %v2891_v16 = vadd.f32 %v2890_v38, %v2889_v6  ;;  %v4103_v11 = vadd.f32 %v1532_v45, %v808_v29  ;;  %v810_v6 = vadd.f32 %v3927_v49, %v3904_v63 }
 0x1c1   :  { %v2892_v59 = vpop.f32.mrf.mxu1  ;;  %v4105_v52 = vpop.f32.mrf.mxu0 }
 0x1c2   :  { %4288 = vst [vmem:[#allocation20_spill] sm:$0xff] %v4103_v11  ;;  %v1537_v50 = vadd.f32 %v2891_v16, %v3997_v7 }
 0x1c3   :  { %v2893_v9 = vpop.f32.mrf.mxu1  ;;  %v4110_v31 = vpop.f32.mrf.mxu0 }
 0x1c4   :  { %v2894_v20 = vadd.f32 %v2893_v9, %v2892_v59  ;;  %v4112_v5 = vadd.f32 %v1537_v50, %v809_v24  ;;  %v811_v59 = vadd.f32 %v3927_v49, %v3890_v19 }
 0x1c5   :  { %v2895_v2 = vpop.f32.mrf.mxu1  ;;  %v4114_v44 = vpop.f32.mrf.mxu0 }
 0x1c6   :  { %4289 = vst [vmem:[#allocation21_spill] sm:$0xff] %v4112_v5  ;;  %v1540_v29 = vadd.f32 %v2894_v20, %v4005_v23 }
 0x1c7   :  { %v2896_v45 = vpop.f32.mrf.mxu1  ;;  %v4119_v38 = vpop.f32.mrf.mxu0 }
 0x1c8   :  { %v2897_v48 = vadd.f32 %v2896_v45, %v2895_v2  ;;  %v4121_v11 = vadd.f32 %v1540_v29, %v810_v6  ;;  %v812_v2 = vadd.f32 %v3927_v49, %v3900_v39 }
 0x1c9   :  { %v2898_v7 = vpop.f32.mrf.mxu1  ;;  %v4123_v16 = vpop.f32.mrf.mxu0 }
 0x1ca   :  { %4290 = vst [vmem:[#allocation22_spill] sm:$0xff] %v4121_v11  ;;  %v1545_v24 = vadd.f32 %v3993_v0, %v2897_v48 }
 0x1cb   :  { %v2899_v50 = vpop.f32.mrf.mxu1  ;;  %v4128_v9 = vpop.f32.mrf.mxu0 }
 0x1cc   :  { %v2900_v63 = vadd.f32 %v2899_v50, %v2898_v7  ;;  %v4130_v5 = vadd.f32 %v1545_v24, %v811_v59  ;;  %v813_v7 = vadd.f32 %v3927_v49, %v3912_v62 }
 0x1cd   :  { %v2901_v23 = vpop.f32.mrf.mxu1  ;;  %v4132_v20 = vpop.f32.mrf.mxu0 }
 0x1ce   :  { %4291 = vst [vmem:[#allocation23_spill] sm:$0xff] %v4130_v5  ;;  %v1548_v6 = vadd.f32 %v4001_v14, %v2900_v63 }
 0x1cf   :  { %v2902_v29 = vpop.f32.mrf.mxu1  ;;  %v4137_v45 = vpop.f32.mrf.mxu0 }
 0x1d0   :  { %v2903_v19 = vadd.f32 %v2902_v29, %v2901_v23  ;;  %v4139_v11 = vadd.f32 %v1548_v6, %v812_v2  ;;  %v814_v23 = vadd.f32 %v3927_v49, %v3920_v4 }
 0x1d1   :  { %v2904_v0 = vpop.f32.mrf.mxu1  ;;  %v4141_v48 = vpop.f32.mrf.mxu0 }
 0x1d2   :  { %4292 = vst [vmem:[#allocation24_spill] sm:$0xff] %v4139_v11  ;;  %v1553_v59 = vadd.f32 %v2903_v19, %v4013_v47 }
 0x1d3   :  { %v2905_v24 = vpop.f32.mrf.mxu1  ;;  %v4146_v50 = vpop.f32.mrf.mxu0 }
 0x1d4   :  { %v2906_v39 = vadd.f32 %v2905_v24, %v2904_v0  ;;  %v4148_v5 = vadd.f32 %v1553_v59, %v813_v7  ;;  %v815_v0 = vadd.f32 %v3927_v49, %v3909_v30 }
 0x1d5   :  { %v2907_v14 = vpop.f32.mrf.mxu1  ;;  %v4150_v63 = vpop.f32.mrf.mxu0 }
 0x1d6   :  { %4293 = vst [vmem:[#allocation25_spill] sm:$0xff] %v4148_v5  ;;  %v1556_v2 = vadd.f32 %v2906_v39, %v4022_v53 }
 0x1d7   :  { %v2908_v6 = vpop.f32.mrf.mxu1  ;;  %v4155_v29 = vpop.f32.mrf.mxu0 }
 0x1d8   :  { %v2909_v62 = vadd.f32 %v2908_v6, %v2907_v14  ;;  %v4157_v11 = vadd.f32 %v1556_v2, %v814_v23  ;;  %v816_v14 = vadd.f32 %v3927_v49, %v3917_v8  ;;  %v2961_v23 = vadd.f32 %v4047_v61, %v4042_v41 }
 0x1d9   :  { %v2910_v47 = vpop.f32.mrf.mxu1  ;;  %v4159_v19 = vpop.f32.mrf.mxu0  ;;  %v2964_v6 = vadd.f32 %v4056_v40, %v4051_v13  ;;  %v2958_v8 = vadd.f32 %v4038_v32, %v4033_v22 }
 0x1da   :  { %v1561_v7 = vadd.f32 %v4009_v58, %v2909_v62 }
 0x1db   :  { %v2911_v59 = vpop.f32.mrf.mxu1  ;;  %v4164_v24 = vpop.f32.mrf.mxu0 }
 0x1dc   :  { %v4166_v4 = vadd.f32 %v1561_v7, %v815_v0  ;;  %v2912_v53 = vadd.f32 %v2911_v59, %v2910_v47 }
 0x1dd   :  { %v4168_v39 = vpop.f32.mrf.mxu0  ;;  %v3187_v5 = vpop.f32.mrf.mxu1 }
 0x1de   :  { %v1564_v2 = vadd.f32 %v4017_v25, %v2912_v53  ;;  %v2069_v47 = vadd.f32 %v3187_v5, %v2961_v23 }
 0x1df   :  { %v4175_v30 = vpop.f32.mrf.mxu0  ;;  %v2060_v58 = vpop.f32.mrf.mxu1 }
 0x1e0   :  { %v4179_v62 = vadd.f32 %v1564_v2, %v816_v14  ;;  %v2061_v0 = vadd.f32 %v4029_v26, %v2060_v58  ;;  %v2189_v53 = vadd.f32 %v2069_v47, %v3939_v18  ;;  %v2973_v14 = vadd.f32 %v4083_v10, %v4078_v60 }
 0x1e1   :  { %v4182_v7 = vpop.f32.mrf.mxu0  ;;  %v3188_v59 = vpop.f32.mrf.mxu1  ;;  %v2967_v2 = vadd.f32 %v4065_v57, %v4060_v15  ;;  %v2976_v18 = vadd.f32 %v4092_v36, %v4087_v12  ;;  %v2970_v60 = vadd.f32 %v4074_v34, %v4069_v56 }
 0x1e2   :  { %v2187_v49 = vadd.f32 %v2061_v0, %v3931_v35  ;;  %v2072_v25 = vadd.f32 %v3188_v59, %v2964_v6 }
 0x1e3   :  { %v4187_v41 = vpop.f32.mrf.mxu0  ;;  %v2063_v61 = vpop.f32.mrf.mxu1 }
 0x1e4   :  { %v2190_v13 = vadd.f32 %v2072_v25, %v3943_v1  ;;  %v2064_v40 = vadd.f32 %v2958_v8, %v2063_v61 }
 0x1e5   :  { %v4191_v5 = vpop.f32.mrf.mxu0  ;;  %v3191_v26 = vpop.f32.mrf.mxu1 }
 0x1e6   :  { %v2578_v23 = vpack.c.bf16 %v2190_v13, %v2189_v53  ;;  %v2188_v22 = vadd.f32 %v2064_v40, %v3935_v3  ;;  %v2085_v58 = vadd.f32 %v3191_v26, %v2973_v14 }
 0x1e7   :  { %v4196_v32 = vpop.f32.mrf.mxu0  ;;  %v2076_v35 = vpop.f32.mrf.mxu1 }
 0x1e8   :  { %2650 = vst [vmem:[#allocation7 + $0x8] sm:$0xff] %v2578_v23   ;;  %v2573_v1 = vpack.c.bf16 %v2188_v22, %v2187_v49  ;;  %v2077_v3 = vadd.f32 %v2967_v2, %v2076_v35  ;;  %v2193_v8 = vadd.f32 %v2085_v58, %v3959_v55  ;;  %v2985_v49 = vadd.f32 %v4119_v38, %v4114_v44 }
 0x1e9   :  { %v4202_v6 = vpop.f32.mrf.mxu0  ;;  %v3192_v47 = vpop.f32.mrf.mxu1  ;;  %v2979_v55 = vadd.f32 %v4101_v37, %v4096_v46  ;;  %v2997_v35 = vadd.f32 %v4155_v29, %v4150_v63  ;;  %v2991_v58 = vadd.f32 %v4137_v45, %v4132_v20  ;;  %v2994_v63 = vadd.f32 %v4146_v50, %v4141_v48 }
 0x1ea   :  { %2574 = vst [vmem:[#allocation7] sm:$0xff] %v2573_v1   ;;  %v2088_v10 = vadd.f32 %v3192_v47, %v2976_v18  ;;  %v2191_v25 = vadd.f32 %v2077_v3, %v3947_v27  ;;  %v2982_v27 = vadd.f32 %v4110_v31, %v4105_v52 }
 0x1eb   :  { %v3011_v0 = vpop.f32.mrf.mxu0  ;;  %v2079_v59 = vpop.f32.mrf.mxu1 }
 0x1ec   :  { %v2194_v15 = vadd.f32 %v2088_v10, %v3967_v51  ;;  %v2080_v57 = vadd.f32 %v2970_v60, %v2079_v59  ;;  %v2988_v51 = vadd.f32 %v4128_v9, %v4123_v16 }
 0x1ed   :  { %v4208_v12 = vpop.f32.mrf.mxu0  ;;  %v3195_v36 = vpop.f32.mrf.mxu1 }
 0x1ee   :  { %v2588_v61 = vpack.c.bf16 %v2194_v15, %v2193_v8  ;;  %v2192_v56 = vadd.f32 %v2080_v57, %v3953_v17  ;;  %v2101_v40 = vadd.f32 %v3195_v36, %v2985_v49  ;;  %v4294_v15 = vld [vmem:[#allocation11_spill] sm:$0xff]  ;;  %v4295_v49 = vld [vmem:[#allocation12_spill] sm:$0xff] }
 0x1ef   :  { %v4214_v34 = vpop.f32.mrf.mxu0  ;;  %v2092_v53 = vpop.f32.mrf.mxu1 }
 0x1f0   :  { %2652 = vst [vmem:[#allocation7 + $0x18] sm:$0xff] %v2588_v61   ;;  %v2583_v13 = vpack.c.bf16 %v2192_v56, %v2191_v25  ;;  %v2093_v17 = vadd.f32 %v2979_v55, %v2092_v53  ;;  %v2197_v46 = vadd.f32 %v2101_v40, %v3991_v28  ;;  %v3000_v28 = vadd.f32 %v4164_v24, %v4159_v19 }
 0x1f1   :  { %v4220_v26 = vpop.f32.mrf.mxu0  ;;  %v3196_v44 = vpop.f32.mrf.mxu1  ;;  %v3009_v24 = vadd.f32 %v4196_v32, %v4191_v5  ;;  %v3003_v61 = vadd.f32 %v4175_v30, %v4168_v39  ;;  %v3006_v5 = vadd.f32 %v4187_v41, %v4182_v7  ;;  %v3015_v41 = vadd.f32 %v4214_v34, %v4208_v12 }
 0x1f2   :  { %2651 = vst [vmem:[#allocation7 + $0x10] sm:$0xff] %v2583_v13   ;;  %v2104_v38 = vadd.f32 %v3196_v44, %v2988_v51  ;;  %v2195_v2 = vadd.f32 %v2093_v17, %v3975_v54  ;;  %v4296_v44 = vld [vmem:[#allocation15_spill] sm:$0xff]  ;;  %v4297_v17 = vld [vmem:[#allocation16_spill] sm:$0xff] }
 0x1f3   :  { %v4224_v14 = vpop.f32.mrf.mxu0  ;;  %v2095_v23 = vpop.f32.mrf.mxu1 }
 0x1f4   :  { %v2198_v37 = vadd.f32 %v2104_v38, %v3999_v33  ;;  %v2096_v16 = vadd.f32 %v2982_v27, %v2095_v23  ;;  %v4298_v23 = vld [vmem:[#allocation13_spill] sm:$0xff] }
 0x1f5   :  { %v3019_v9 = vpop.f32.mrf.mxu0  ;;  %v3199_v22 = vpop.f32.mrf.mxu1 }
 0x1f6   :  { %v2598_v18 = vpack.c.bf16 %v2198_v37, %v2197_v46  ;;  %v2196_v52 = vadd.f32 %v2096_v16, %v3983_v43  ;;  %v2117_v47 = vadd.f32 %v3199_v22, %v2997_v35  ;;  %v4299_v16 = vld [vmem:[#allocation14_spill] sm:$0xff] }
 0x1f7   :  { %v3020_v31 = vpop.f32.mrf.mxu0  ;;  %v2108_v1 = vpop.f32.mrf.mxu1 }
 0x1f8   :  { %2654 = vst [vmem:[#allocation7 + $0x28] sm:$0xff] %v2598_v18   ;;  %v2593_v33 = vpack.c.bf16 %v2196_v52, %v2195_v2  ;;  %v2109_v54 = vadd.f32 %v2991_v58, %v2108_v1  ;;  %v2201_v59 = vadd.f32 %v2117_v47, %v4024_v21  ;;  %v3012_v21 = vadd.f32 %v3011_v0, %v4202_v6 }
 0x1f9   :  { %v3022_v60 = vpop.f32.mrf.mxu0  ;;  %v3200_v3 = vpop.f32.mrf.mxu1  ;;  %v3021_v0 = vadd.f32 %v3020_v31, %v3019_v9 }
 0x1fa   :  { %2653 = vst [vmem:[#allocation7 + $0x20] sm:$0xff] %v2593_v33   ;;  %v2120_v29 = vadd.f32 %v3200_v3, %v3000_v28  ;;  %v2199_v57 = vadd.f32 %v2109_v54, %v4294_v15  ;;  %v3018_v28 = vadd.f32 %v4224_v14, %v4220_v26  ;;  %v4300_v3 = vld [vmem:[#allocation19_spill] sm:$0xff]  ;;  %v4301_v54 = vld [vmem:[#allocation20_spill] sm:$0xff] }
 0x1fb   :  { %v3023_v43 = vpop.f32.mrf.mxu0  ;;  %v2111_v10 = vpop.f32.mrf.mxu1 }
 0x1fc   :  { %v2202_v20 = vadd.f32 %v2120_v29, %v4031_v42  ;;  %v2112_v45 = vadd.f32 %v2994_v63, %v2111_v10  ;;  %v3024_v2 = vadd.f32 %v3023_v43, %v3022_v60  ;;  %v4302_v43 = vld [vmem:[#allocation17_spill] sm:$0xff] }
 0x1fd   :  { %v3025_v8 = vpop.f32.mrf.mxu0  ;;  %v3203_v19 = vpop.f32.mrf.mxu1 }
 0x1fe   :  { %v2608_v36 = vpack.c.bf16 %v2202_v20, %v2201_v59  ;;  %v2200_v48 = vadd.f32 %v2112_v45, %v4295_v49  ;;  %v2133_v56 = vadd.f32 %v3203_v19, %v3009_v24  ;;  %v4303_v45 = vld [vmem:[#allocation18_spill] sm:$0xff] }
 0x1ff   :  { %v3026_v50 = vpop.f32.mrf.mxu0  ;;  %v2124_v25 = vpop.f32.mrf.mxu1 }
 0x200   :  { %2656 = vst [vmem:[#allocation7 + $0x38] sm:$0xff] %v2608_v36   ;;  %v2603_v42 = vpack.c.bf16 %v2200_v48, %v2199_v57  ;;  %v2125_v32 = vadd.f32 %v3003_v61, %v2124_v25  ;;  %v2205_v27 = vadd.f32 %v2133_v56, %v4296_v44  ;;  %v3027_v14 = vadd.f32 %v3026_v50, %v3025_v8  ;;  %v4306_v8 = vld [vmem:[#allocation21_spill] sm:$0xff] }
 0x201   :  { %v3028_v53 = vpop.f32.mrf.mxu0  ;;  %v3204_v55 = vpop.f32.mrf.mxu1 }
 0x202   :  { %2655 = vst [vmem:[#allocation7 + $0x30] sm:$0xff] %v2603_v42   ;;  %v2136_v51 = vadd.f32 %v3204_v55, %v3012_v21  ;;  %v2203_v46 = vadd.f32 %v2125_v32, %v4298_v23  ;;  %v4304_v55 = vld [vmem:[#allocation23_spill] sm:$0xff]  ;;  %v4305_v32 = vld [vmem:[#allocation24_spill] sm:$0xff] }
 0x203   :  { %v3029_v13 = vpop.f32.mrf.mxu0  ;;  %v2127_v40 = vpop.f32.mrf.mxu1 }
 0x204   :  { %v2206_v38 = vadd.f32 %v2136_v51, %v4297_v17  ;;  %v2128_v39 = vadd.f32 %v3006_v5, %v2127_v40  ;;  %v3030_v25 = vadd.f32 %v3029_v13, %v3028_v53 }
 0x205   :  { %v3031_v30 = vpop.f32.mrf.mxu0  ;;  %v3207_v6 = vpop.f32.mrf.mxu1 }
 0x206   :  { %v2618_v37 = vpack.c.bf16 %v2206_v38, %v2205_v27  ;;  %v2204_v22 = vadd.f32 %v2128_v39, %v4299_v16  ;;  %v2149_v52 = vadd.f32 %v3207_v6, %v3021_v0  ;;  %v4307_v38 = vld [vmem:[#allocation22_spill] sm:$0xff] }
 0x207   :  { %v3032_v35 = vpop.f32.mrf.mxu0  ;;  %v2140_v7 = vpop.f32.mrf.mxu1 }
 0x208   :  { %2658 = vst [vmem:[#allocation7 + $0x48] sm:$0xff] %v2618_v37   ;;  %v2613_v18 = vpack.c.bf16 %v2204_v22, %v2203_v46  ;;  %v2141_v9 = vadd.f32 %v3015_v41, %v2140_v7  ;;  %v2209_v63 = vadd.f32 %v2149_v52, %v4300_v3  ;;  %v3033_v60 = vadd.f32 %v3032_v35, %v3031_v30 }
 0x209   :  { %v3034_v1 = vpop.f32.mrf.mxu0  ;;  %v3208_v58 = vpop.f32.mrf.mxu1 }
 0x20a   :  { %2657 = vst [vmem:[#allocation7 + $0x40] sm:$0xff] %v2613_v18   ;;  %v2152_v31 = vadd.f32 %v3208_v58, %v3024_v2  ;;  %v2207_v59 = vadd.f32 %v2141_v9, %v4302_v43  ;;  %v4308_v18 = vld [vmem:[#allocation25_spill] sm:$0xff] }
 0x20b   :  { %v3035_v33 = vpop.f32.mrf.mxu0  ;;  %v2143_v47 = vpop.f32.mrf.mxu1 }
 0x20c   :  { %v2210_v29 = vadd.f32 %v2152_v31, %v4301_v54  ;;  %v2144_v10 = vadd.f32 %v3018_v28, %v2143_v47  ;;  %v3036_v15 = vadd.f32 %v3035_v33, %v3034_v1 }
 0x20d   :  { %v3037_v12 = vpop.f32.mrf.mxu0  ;;  %v3211_v34 = vpop.f32.mrf.mxu1 }
 0x20e   :  { %v2628_v20 = vpack.c.bf16 %v2210_v29, %v2209_v63  ;;  %v2208_v19 = vadd.f32 %v2144_v10, %v4303_v45  ;;  %v2165_v36 = vadd.f32 %v3211_v34, %v3033_v60 }
 0x20f   :  { %v3038_v24 = vpop.f32.mrf.mxu0  ;;  %v2156_v26 = vpop.f32.mrf.mxu1 }
 0x210   :  { %2660 = vst [vmem:[#allocation7 + $0x58] sm:$0xff] %v2628_v20   ;;  %v2623_v57 = vpack.c.bf16 %v2208_v19, %v2207_v59  ;;  %v2157_v61 = vadd.f32 %v3027_v14, %v2156_v26  ;;  %v2213_v5 = vadd.f32 %v2165_v36, %v4304_v55  ;;  %v3039_v53 = vadd.f32 %v3038_v24, %v3037_v12 }
 0x211   :  { %v3040_v49 = vpop.f32.mrf.mxu0  ;;  %v3212_v48 = vpop.f32.mrf.mxu1 }
 0x212   :  { %2659 = vst [vmem:[#allocation7 + $0x50] sm:$0xff] %v2623_v57   ;;  %v2168_v21 = vadd.f32 %v3212_v48, %v3036_v15  ;;  %v2211_v50 = vadd.f32 %v2157_v61, %v4306_v8 }
 0x213   :  { %v3041_v42 = vpop.f32.mrf.mxu0  ;;  %v2159_v56 = vpop.f32.mrf.mxu1 }
 0x214   :  { %v2214_v51 = vadd.f32 %v2168_v21, %v4305_v32  ;;  %v2160_v40 = vadd.f32 %v3030_v25, %v2159_v56  ;;  %v3042_v37 = vadd.f32 %v3041_v42, %v3040_v49 }
 0x215   :  { %v3043_v44 = vpop.f32.mrf.mxu0  ;;  %v3215_v27 = vpop.f32.mrf.mxu1 }
 0x216   :  { %v2638_v17 = vpack.c.bf16 %v2214_v51, %v2213_v5  ;;  %v2212_v39 = vadd.f32 %v2160_v40, %v4307_v38 }
 0x217   :  { %v3044_v30 = vpop.f32.mrf.mxu0  ;;  %v2172_v6 = vpop.f32.mrf.mxu1 }
 0x218   :  { %2662 = vst [vmem:[#allocation7 + $0x68] sm:$0xff] %v2638_v17   ;;  %v2633_v13 = vpack.c.bf16 %v2212_v39, %v2211_v50  ;;  %v3045_v0 = vadd.f32 %v3044_v30, %v3043_v44  ;;  %v2173_v16 = vadd.f32 %v3039_v53, %v2172_v6 }
 0x219   :  { %v3046_v23 = vpop.f32.mrf.mxu0  ;;  %v3216_v46 = vpop.f32.mrf.mxu1 }
 0x21a   :  { %2661 = vst [vmem:[#allocation7 + $0x60] sm:$0xff] %v2633_v13   ;;  %v2181_v7 = vadd.f32 %v3215_v27, %v3045_v0  ;;  %v2215_v52 = vadd.f32 %v2173_v16, %v4308_v18 }
 0x21b   :  { %v3047_v22 = vpop.f32.mrf.mxu0  ;;  %v2175_v35 = vpop.f32.mrf.mxu1 }
 0x21c   :  { %v3048_v41 = vadd.f32 %v3047_v22, %v3046_v23  ;;  %v2176_v2 = vadd.f32 %v3042_v37, %v2175_v35  ;;  %v2217_v28 = vadd.f32 %v2181_v7, %v4166_v4 }
 0x21e   :  { %v2184_v1 = vadd.f32 %v3216_v46, %v3048_v41  ;;  %v2216_v58 = vadd.f32 %v2176_v2, %v4157_v11 }
 0x220   :  { %v2218_v9 = vadd.f32 %v2184_v1, %v4179_v62  ;;  %v2643_v31 = vpack.c.bf16 %v2216_v58, %v2215_v52 }
 0x222   :  { %v2648_v33 = vpack.c.bf16 %v2218_v9, %v2217_v28  ;;  %2663 = vst [vmem:[#allocation7 + $0x70] sm:$0xff] %v2643_v31  }
 0x224   :  { %2664 = vst [vmem:[#allocation7 + $0x78] sm:$0xff] %v2648_v33  }
 0x225   :  { %3405 = shalt.err (!%p3402_p0)
}
 0x226   :  { %2390 = dma.vmem_to_hbm [thread:$0]  %s2385_s24, 2048, %s4278_s3, [#allocation4], %s3421_s15, %s3421_s15, %s3422_s16  }
 0x227   :  { %3418 = dma.done.wait [#allocation4], 2048  }
 0x228   :  { %3419 = vsyncadd [#allocation4], 4294965248 }
 0x229   :  { %2394 = vsyncpa [#allocation3], 1 }
 0x22a   :  { %2395 = vsyncpa [#allocation6], 1 }
 0x22b   :  { %2396 = vsyncpa [#allocation4], 1 }

</bundles_post_ra>
